<compile_context>
chip_gen: v7x
topology: tpu7x:2x2x1
jax: 0.10.0
libtpu: 0.0.40
codegen_flags: <defaults>
</compile_context>

<pallas_src>
import functools
import math

import jax
import jax.numpy as jnp
from jax.experimental import pallas as pl
from jax.experimental.pallas import tpu as pltpu


# ----------------------------------------------------------------------------- helpers

def make_positional_encoding_table(d_model: int, max_len: int = 5000) -> jnp.ndarray:
    """(max_len, d_model) sin/cos table, exactly like the PyTorch module."""
    assert d_model % 2 == 0, "d_model must be even (pe interleaves sin/cos pairs)"
    position = jnp.arange(max_len, dtype=jnp.float32)[:, None]                      # (L, 1)
    div_term = jnp.exp(
        jnp.arange(0, d_model, 2, dtype=jnp.float32) * (-math.log(10000.0) / d_model)
    )                                                                               # (D/2,)
    args = position * div_term                                                      # (L, D/2)
    pe = jnp.zeros((max_len, d_model), jnp.float32)
    pe = pe.at[:, 0::2].set(jnp.sin(args))
    pe = pe.at[:, 1::2].set(jnp.cos(args))
    return pe


def _split_patch(x: jnp.ndarray, gap: int) -> jnp.ndarray:
    """Pure layout: [B, in_dim] -> [B, P, gap]  (matches TransformerEncoder.split_patch)."""
    batch, in_dim = x.shape
    num_patch = in_dim // gap
    patch_dim = num_patch * gap
    patches = x[:, :patch_dim].reshape(batch, num_patch, gap)
    if patch_dim < in_dim:                                   # overlapping last patch
        last = x[:, in_dim - gap:][:, None, :]
        patches = jnp.concatenate([patches, last], axis=1)
    return patches


def _layer_norm(x, gamma, beta, eps=1e-5):
    mu = jnp.mean(x, axis=-1, keepdims=True)
    xc = x - mu
    var = jnp.mean(xc * xc, axis=-1, keepdims=True)
    return xc * jax.lax.rsqrt(var + eps) * gamma + beta


def _pick_batch_tile(batch: int, num_patch: int, target_rows: int = 512) -> int:
    """Multiple-of-8 batch tile dividing `batch`, targeting ~target_rows flattened rows
    per grid step and >=2 grid steps (v7x megacore) whenever batch >= 16."""
    if batch % 8 != 0:
        return batch                     # block == full dim, still legal for Mosaic
    cap = max(8, (target_rows // max(num_patch, 1)) // 8 * 8)
    bt = min(batch, cap)
    if batch >= 16:
        bt = min(bt, max(8, (batch // 2) // 8 * 8))          # >=2 grid steps
    bt = max(8, (bt // 8) * 8)
    while batch % bt != 0:
        bt -= 8
    return bt


# ----------------------------------------------------------------------------- kernel

def _encoder_kernel(x_ref, pe_ref, bias_ref, mean_ref,
                    w_emb_ref, w_qkv_ref, wo_ref, w1_ref, w2_ref,
                    b_qkv_ref, b1_ref, vecs_ref,
                    out_ref, *, n_heads):
    f32 = jnp.float32
    emb = wo_ref.shape[0]
    head_dim = emb // n_heads

    def mm(a, w):
        # Single 2-D MXU matmul on a tall flattened activation.
        return jnp.dot(a, w, preferred_element_type=f32)

    # Packed small params: rows of a single resident (9, E) array.
    vecs = vecs_ref[...]
    b_emb, g_emb, beta_emb = vecs[0:1], vecs[1:2], vecs[2:3]
    bo,    g1,    beta1    = vecs[3:4], vecs[4:5], vecs[5:6]
    b2,    g2,    beta2    = vecs[6:7], vecs[7:8], vecs[8:9]

    # ---- patch embedding: Linear(gap, emb) + LayerNorm, then + positional encoding ----
    x = x_ref[...].astype(f32)                                   # (rows, gap)
    h = _layer_norm(mm(x, w_emb_ref[...]) + b_emb, g_emb, beta_emb)
    # Module quirk preserved: pe row selected by *batch* index, broadcast over patches
    # (expanded wrapper-side into a dense (rows, emb) slab).
    h = h + pe_ref[...]
    # TODO(synk): dropout(p=0.1) skipped -> eval-mode identity.

    # ---- fused QKV projection: one (rows, E) @ (E, 3E) matmul --------------------------
    qkv = mm(h, w_qkv_ref[...]) + b_qkv_ref[...]
    q, k, v = qkv[:, :emb], qkv[:, emb:2 * emb], qkv[:, 2 * emb:]

    # ---- multi-head self-attention over the patches of each example --------------------
    # Rows of different examples share the tall 2-D activation; the resident additive
    # block-diagonal bias (0 in-block, -1e30 off-block) makes each row softmax exactly
    # the per-example softmax, so everything stays plain 2-D matmuls (no reshapes).
    bias = bias_ref[...]
    scale = 1.0 / math.sqrt(head_dim)
    wo = wo_ref[...]
    o_proj = jnp.zeros(h.shape, f32)
    for hh in range(n_heads):
        sl = slice(hh * head_dim, (hh + 1) * head_dim)
        qh, kh, vh = q[:, sl], k[:, sl], v[:, sl]
        s = jnp.einsum("md,nd->mn", qh, kh, preferred_element_type=f32) * scale + bias
        s = s - jnp.max(s, axis=-1, keepdims=True)
        p = jnp.exp(s)
        p = p * pl.reciprocal(jnp.sum(p, axis=-1, keepdims=True), approx=True)
        oh = mm(p, vh)                                           # (rows, head_dim)
        # concat_h(o_h) @ Wo  ==  sum_h  o_h @ Wo[h*hd:(h+1)*hd, :]  (one logical
        # output projection, decomposed per head to avoid a lane concat).
        o_proj = o_proj + mm(oh, wo[sl, :])
    attn = o_proj + bo

    h = _layer_norm(h + attn, g1, beta1)

    # ---- feed-forward: Linear -> ReLU -> Linear, residual + LayerNorm ------------------
    f = jnp.maximum(mm(h, w1_ref[...]) + b1_ref[...], 0.0)
    f = mm(f, w2_ref[...]) + b2
    h = _layer_norm(h + f, g2, beta2)

    # ---- mean over the patch axis as a (bt, rows) @ (rows, emb) averaging matmul -------
    out_ref[...] = mm(mean_ref[...], h).astype(out_ref.dtype)


# ----------------------------------------------------------------------------- wrapper

def transformer_encoder_forward(x, params, *, gap, n_heads=4, target_rows=512):
    """x: [batch, in_dim] float32 -> [batch, emb_dim]  (eval-mode TransformerEncoder forward)."""
    f32 = jnp.float32
    x = x.astype(f32)
    batch, _in_dim = x.shape
    patches = _split_patch(x, gap)                        # (B, P, gap) — pure layout
    _, num_patch, gap_ = patches.shape
    emb = params["w_emb"].shape[1]
    assert emb % n_heads == 0, "emb_dim must be divisible by n_heads"

    pe_table = params["pe_table"]
    assert pe_table.shape[0] >= batch, (
        "PositionalEncoding table too short: the original module indexes pe by x.size(0), "
        "which is the *batch* dimension for this batch_first encoder")

    bt = _pick_batch_tile(batch, num_patch, target_rows)
    grid = (batch // bt,)
    rows = bt * num_patch                                 # flattened rows per grid step

    # Lane/sublane-dense 2-D activations (example-major, patch-minor rows).
    patches2d = patches.reshape(batch * num_patch, gap_)
    pe2d = jnp.repeat(pe_table[:batch].astype(f32), num_patch, axis=0)   # (B*P, emb)

    # Per-tile block-diagonal attention bias + patch-mean matrix; identical for every
    # grid step -> resident inputs.
    rid = jnp.arange(rows, dtype=jnp.int32) // num_patch
    attn_bias = jnp.where(rid[:, None] == rid[None, :], 0.0, -1e30).astype(f32)
    mean_mat = jnp.where(jnp.arange(bt, dtype=jnp.int32)[:, None] == rid[None, :],
                         1.0 / num_patch, 0.0).astype(f32)

    # Fused QKV weights/biases + packed small vectors.
    w_qkv = jnp.concatenate([params["wq"], params["wk"], params["wv"]], axis=1).astype(f32)
    b_qkv = jnp.concatenate([params["bq"], params["bk"], params["bv"]]).reshape(1, -1).astype(f32)
    vecs = jnp.stack([params["b_emb"], params["ln_emb_g"], params["ln_emb_b"],
                      params["bo"], params["ln1_g"], params["ln1_b"],
                      params["b2"], params["ln2_g"], params["ln2_b"]]).astype(f32)

    const_args = (
        attn_bias, mean_mat,
        params["w_emb"].astype(f32), w_qkv, params["wo"].astype(f32),
        params["w1"].astype(f32), params["w2"].astype(f32),
        b_qkv, params["b1"].reshape(1, -1).astype(f32), vecs,
    )

    def resident(arr):
        # Full-array block, same block index every grid step -> loaded once, kept resident.
        nd = arr.ndim
        return pl.BlockSpec(arr.shape, lambda b, _n=nd: (0,) * _n)

    in_specs = [
        pl.BlockSpec((rows, gap_), lambda b: (b, 0)),
        pl.BlockSpec((rows, emb), lambda b: (b, 0)),
    ] + [resident(a) for a in const_args]

    kernel = functools.partial(_encoder_kernel, n_heads=n_heads)

    return pl.pallas_call(
        kernel,
        out_shape=jax.ShapeDtypeStruct((batch, emb), f32),
        grid_spec=pltpu.PrefetchScalarGridSpec(
            num_scalar_prefetch=0,
            grid=grid,
            in_specs=in_specs,
            out_specs=pl.BlockSpec((bt, emb), lambda b: (b, 0)),
        ),
        compiler_params=pltpu.CompilerParams(
            dimension_semantics=("parallel",),
        ),
    )(patches2d, pe2d, *const_args)


# ----------------------------------------------------------------------------- reference

def reference_forward(x, params, *, gap, n_heads=4):
    """Pure-JAX reference (eval mode), numerically mirrors the module math."""
    ein = functools.partial(jnp.einsum, precision=jax.lax.Precision.HIGHEST)
    x = x.astype(jnp.float32)
    patches = _split_patch(x, gap)
    batch, num_patch, _ = patches.shape
    emb = params["w_emb"].shape[1]
    head_dim = emb // n_heads

    h = ein("bpg,ge->bpe", patches, params["w_emb"]) + params["b_emb"]
    h = _layer_norm(h, params["ln_emb_g"], params["ln_emb_b"])
    h = h + params["pe_table"][:batch][:, None, :]        # pe indexed by batch (module quirk)

    q = ein("bpe,ef->bpf", h, params["wq"]) + params["bq"]
    k = ein("bpe,ef->bpf", h, params["wk"]) + params["bk"]
    v = ein("bpe,ef->bpf", h, params["wv"]) + params["bv"]
    q = q.reshape(batch, num_patch, n_heads, head_dim)
    k = k.reshape(batch, num_patch, n_heads, head_dim)
    v = v.reshape(batch, num_patch, n_heads, head_dim)
    s = ein("bqhd,bkhd->bhqk", q, k) / math.sqrt(head_dim)
    p = jax.nn.softmax(s, axis=-1)
    o = ein("bhqk,bkhd->bqhd", p, v).reshape(batch, num_patch, emb)
    o = ein("bpe,ef->bpf", o, params["wo"]) + params["bo"]
    h = _layer_norm(h + o, params["ln1_g"], params["ln1_b"])

    f = jax.nn.relu(ein("bpe,ef->bpf", h, params["w1"]) + params["b1"])
    f = ein("bpf,fe->bpe", f, params["w2"]) + params["b2"]
    h = _layer_norm(h + f, params["ln2_g"], params["ln2_b"])
    return h.mean(axis=1)


def init_params(key, *, gap, emb_dim, ffn_dim, max_len=5000):
    ks = jax.random.split(key, 14)

    def dense(k, fan_in, fan_out):
        return jax.random.normal(k, (fan_in, fan_out), jnp.float32) / math.sqrt(fan_in)

    def bias(k, dim):
        return 0.1 * jax.random.normal(k, (dim,), jnp.float32)

    E, F, G = emb_dim, ffn_dim, gap
    return {
        "pe_table": make_positional_encoding_table(E, max_len),
        "w_emb": dense(ks[0], G, E), "b_emb": bias(ks[1], E),
        "ln_emb_g": jnp.ones((E,), jnp.float32), "ln_emb_b": jnp.zeros((E,), jnp.float32),
        "wq": dense(ks[2], E, E), "bq": bias(ks[3], E),
        "wk": dense(ks[4], E, E), "bk": bias(ks[5], E),
        "wv": dense(ks[6], E, E), "bv": bias(ks[7], E),
        "wo": dense(ks[8], E, E), "bo": bias(ks[9], E),
        "ln1_g": jnp.ones((E,), jnp.float32), "ln1_b": jnp.zeros((E,), jnp.float32),
        "w1": dense(ks[10], E, F), "b1": bias(ks[11], F),
        "w2": dense(ks[12], F, E), "b2": bias(ks[13], E),
        "ln2_g": jnp.ones((E,), jnp.float32), "ln2_b": jnp.zeros((E,), jnp.float32),
    }


if __name__ == "__main__":
    # Small shapes consistent with the module defaults: emb_dim=32, ffn_dim=256, n_heads=4.
    # in_dim=72, gap=16 -> 4 full patches + overlapping last patch -> 5 patches per example.
    # batch=16 -> batch tile 8, grid=(2,), so both v7x TensorCores get a step.
    batch, in_dim, gap = 16, 72, 16
    emb_dim, ffn_dim, n_heads = 32, 256, 4

    key = jax.random.PRNGKey(0)
    kx, kp = jax.random.split(key)
    x = jax.random.normal(kx, (batch, in_dim), dtype=jnp.float32)
    params = init_params(kp, gap=gap, emb_dim=emb_dim, ffn_dim=ffn_dim, max_len=64)

    out = transformer_encoder_forward(x, params, gap=gap, n_heads=n_heads)
    out = jax.block_until_ready(out)

    ref = reference_forward(x, params, gap=gap, n_heads=n_heads)
    assert out.shape == (batch, emb_dim)
    err = float(jnp.max(jnp.abs(out - ref)))
    # Loose tolerance: in-kernel MXU f32 matmuls + approx EUP reciprocal in the softmax.
    assert err < 5e-2, f"mismatch vs reference: max abs err = {err}"
    print("KERNEL_OK")
</pallas_src>

<mosaic_0001>
module attributes {stable_mosaic.version = 11 : i64} {
  func.func @_encoder_kernel(%arg0: i32, %arg1: memref<40x16xf32, #tpu.memory_space<vmem>>, %arg2: memref<40x32xf32, #tpu.memory_space<vmem>>, %arg3: memref<40x40xf32, #tpu.memory_space<vmem>>, %arg4: memref<8x40xf32, #tpu.memory_space<vmem>>, %arg5: memref<16x32xf32, #tpu.memory_space<vmem>>, %arg6: memref<32x96xf32, #tpu.memory_space<vmem>>, %arg7: memref<32x32xf32, #tpu.memory_space<vmem>>, %arg8: memref<32x256xf32, #tpu.memory_space<vmem>>, %arg9: memref<256x32xf32, #tpu.memory_space<vmem>>, %arg10: memref<1x96xf32, #tpu.memory_space<vmem>>, %arg11: memref<1x256xf32, #tpu.memory_space<vmem>>, %arg12: memref<9x32xf32, #tpu.memory_space<vmem>>, %arg13: memref<8x32xf32, #tpu.memory_space<vmem>>) attributes {dimension_semantics = [#tpu.dimension_semantics<parallel>], iteration_bounds = array<i64: 2>, scalar_prefetch = 0 : i64, scratch_operands = 0 : i64, tpu.core_type = #tpu.core_type<tc>, window_params = [{transform_indices = @transform_0, window_bounds = array<i64: 40, 16>}, {transform_indices = @transform_1, window_bounds = array<i64: 40, 32>}, {pipeline_mode = #tpu.pipeline_mode<synchronous>, transform_indices = @transform_2, window_bounds = array<i64: 40, 40>}, {pipeline_mode = #tpu.pipeline_mode<synchronous>, transform_indices = @transform_3, window_bounds = array<i64: 8, 40>}, {pipeline_mode = #tpu.pipeline_mode<synchronous>, transform_indices = @transform_4, window_bounds = array<i64: 16, 32>}, {pipeline_mode = #tpu.pipeline_mode<synchronous>, transform_indices = @transform_5, window_bounds = array<i64: 32, 96>}, {pipeline_mode = #tpu.pipeline_mode<synchronous>, transform_indices = @transform_6, window_bounds = array<i64: 32, 32>}, {pipeline_mode = #tpu.pipeline_mode<synchronous>, transform_indices = @transform_7, window_bounds = array<i64: 32, 256>}, {pipeline_mode = #tpu.pipeline_mode<synchronous>, transform_indices = @transform_8, window_bounds = array<i64: 256, 32>}, {pipeline_mode = #tpu.pipeline_mode<synchronous>, transform_indices = @transform_9, window_bounds = array<i64: 1, 96>}, {pipeline_mode = #tpu.pipeline_mode<synchronous>, transform_indices = @transform_10, window_bounds = array<i64: 1, 256>}, {pipeline_mode = #tpu.pipeline_mode<synchronous>, transform_indices = @transform_11, window_bounds = array<i64: 9, 32>}, {transform_indices = @transform_12, window_bounds = array<i64: 8, 32>}]} {
    %c0 = arith.constant 0 : index
    %c0_0 = arith.constant 0 : index
    %0 = vector.load %arg12[%c0, %c0_0] : memref<9x32xf32, #tpu.memory_space<vmem>>, vector<9x32xf32>
    %1 = vector.extract_strided_slice %0 {offsets = [0, 0], sizes = [1, 32], strides = [1, 1]} : vector<9x32xf32> to vector<1x32xf32>
    %2 = vector.extract_strided_slice %0 {offsets = [1, 0], sizes = [1, 32], strides = [1, 1]} : vector<9x32xf32> to vector<1x32xf32>
    %3 = vector.extract_strided_slice %0 {offsets = [2, 0], sizes = [1, 32], strides = [1, 1]} : vector<9x32xf32> to vector<1x32xf32>
    %4 = vector.extract_strided_slice %0 {offsets = [3, 0], sizes = [1, 32], strides = [1, 1]} : vector<9x32xf32> to vector<1x32xf32>
    %5 = vector.extract_strided_slice %0 {offsets = [4, 0], sizes = [1, 32], strides = [1, 1]} : vector<9x32xf32> to vector<1x32xf32>
    %6 = vector.extract_strided_slice %0 {offsets = [5, 0], sizes = [1, 32], strides = [1, 1]} : vector<9x32xf32> to vector<1x32xf32>
    %7 = vector.extract_strided_slice %0 {offsets = [6, 0], sizes = [1, 32], strides = [1, 1]} : vector<9x32xf32> to vector<1x32xf32>
    %8 = vector.extract_strided_slice %0 {offsets = [7, 0], sizes = [1, 32], strides = [1, 1]} : vector<9x32xf32> to vector<1x32xf32>
    %9 = vector.extract_strided_slice %0 {offsets = [8, 0], sizes = [1, 32], strides = [1, 1]} : vector<9x32xf32> to vector<1x32xf32>
    %c0_1 = arith.constant 0 : index
    %c0_2 = arith.constant 0 : index
    %10 = vector.load %arg1[%c0_1, %c0_2] : memref<40x16xf32, #tpu.memory_space<vmem>>, vector<40x16xf32>
    %c0_3 = arith.constant 0 : index
    %c0_4 = arith.constant 0 : index
    %11 = vector.load %arg5[%c0_3, %c0_4] : memref<16x32xf32, #tpu.memory_space<vmem>>, vector<16x32xf32>
    %cst = arith.constant dense<0.000000e+00> : vector<40x32xf32>
    %12 = tpu.matmul %10, %11, %cst {dimension_numbers = #tpu.dot_dimension_numbers<[1], [0], [0], [1], [0, 0, 1, 1], [], []>} : vector<40x16xf32>, vector<16x32xf32>, vector<40x32xf32> -> vector<40x32xf32>
    %13 = vector.broadcast %1 : vector<1x32xf32> to vector<40x32xf32>
    %14 = arith.addf %12, %13 : vector<40x32xf32>
    %cst_5 = arith.constant dense<0.000000e+00> : vector<40xf32>
    %15 = vector.multi_reduction <add>, %14, %cst_5 [1] : vector<40x32xf32> to vector<40xf32>
    %16 = vector.shape_cast %15 : vector<40xf32> to vector<40x1xf32>
    %cst_6 = arith.constant 3.200000e+01 : f32
    %17 = vector.broadcast %cst_6 : f32 to vector<40x1xf32>
    %18 = arith.divf %16, %17 : vector<40x1xf32>
    %19 = vector.broadcast %18 : vector<40x1xf32> to vector<40x32xf32>
    %20 = arith.subf %14, %19 : vector<40x32xf32>
    %21 = arith.mulf %20, %20 : vector<40x32xf32>
    %cst_7 = arith.constant dense<0.000000e+00> : vector<40xf32>
    %22 = vector.multi_reduction <add>, %21, %cst_7 [1] : vector<40x32xf32> to vector<40xf32>
    %23 = vector.shape_cast %22 : vector<40xf32> to vector<40x1xf32>
    %cst_8 = arith.constant 3.200000e+01 : f32
    %24 = vector.broadcast %cst_8 : f32 to vector<40x1xf32>
    %25 = arith.divf %23, %24 : vector<40x1xf32>
    %cst_9 = arith.constant 9.99999974E-6 : f32
    %26 = vector.broadcast %cst_9 : f32 to vector<40x1xf32>
    %27 = arith.addf %25, %26 : vector<40x1xf32>
    %28 = math.rsqrt %27 : vector<40x1xf32>
    %29 = vector.broadcast %28 : vector<40x1xf32> to vector<40x32xf32>
    %30 = arith.mulf %20, %29 : vector<40x32xf32>
    %31 = vector.broadcast %2 : vector<1x32xf32> to vector<40x32xf32>
    %32 = arith.mulf %30, %31 : vector<40x32xf32>
    %33 = vector.broadcast %3 : vector<1x32xf32> to vector<40x32xf32>
    %34 = arith.addf %32, %33 : vector<40x32xf32>
    %c0_10 = arith.constant 0 : index
    %c0_11 = arith.constant 0 : index
    %35 = vector.load %arg2[%c0_10, %c0_11] : memref<40x32xf32, #tpu.memory_space<vmem>>, vector<40x32xf32>
    %36 = arith.addf %34, %35 : vector<40x32xf32>
    %c0_12 = arith.constant 0 : index
    %c0_13 = arith.constant 0 : index
    %37 = vector.load %arg6[%c0_12, %c0_13] : memref<32x96xf32, #tpu.memory_space<vmem>>, vector<32x96xf32>
    %cst_14 = arith.constant dense<0.000000e+00> : vector<40x96xf32>
    %38 = tpu.matmul %36, %37, %cst_14 {dimension_numbers = #tpu.dot_dimension_numbers<[1], [0], [0], [1], [0, 0, 1, 1], [], []>} : vector<40x32xf32>, vector<32x96xf32>, vector<40x96xf32> -> vector<40x96xf32>
    %c0_15 = arith.constant 0 : index
    %c0_16 = arith.constant 0 : index
    %39 = vector.load %arg10[%c0_15, %c0_16] : memref<1x96xf32, #tpu.memory_space<vmem>>, vector<1x96xf32>
    %40 = vector.broadcast %39 : vector<1x96xf32> to vector<40x96xf32>
    %41 = arith.addf %38, %40 : vector<40x96xf32>
    %42 = vector.extract_strided_slice %41 {offsets = [0, 0], sizes = [40, 32], strides = [1, 1]} : vector<40x96xf32> to vector<40x32xf32>
    %43 = vector.extract_strided_slice %41 {offsets = [0, 32], sizes = [40, 32], strides = [1, 1]} : vector<40x96xf32> to vector<40x32xf32>
    %44 = vector.extract_strided_slice %41 {offsets = [0, 64], sizes = [40, 32], strides = [1, 1]} : vector<40x96xf32> to vector<40x32xf32>
    %c0_17 = arith.constant 0 : index
    %c0_18 = arith.constant 0 : index
    %45 = vector.load %arg3[%c0_17, %c0_18] : memref<40x40xf32, #tpu.memory_space<vmem>>, vector<40x40xf32>
    %c0_19 = arith.constant 0 : index
    %c0_20 = arith.constant 0 : index
    %46 = vector.load %arg7[%c0_19, %c0_20] : memref<32x32xf32, #tpu.memory_space<vmem>>, vector<32x32xf32>
    %cst_21 = arith.constant 0.000000e+00 : f32
    %47 = vector.broadcast %cst_21 : f32 to vector<40x32xf32>
    %48 = vector.extract_strided_slice %42 {offsets = [0, 0], sizes = [40, 8], strides = [1, 1]} : vector<40x32xf32> to vector<40x8xf32>
    %49 = vector.extract_strided_slice %43 {offsets = [0, 0], sizes = [40, 8], strides = [1, 1]} : vector<40x32xf32> to vector<40x8xf32>
    %50 = vector.extract_strided_slice %44 {offsets = [0, 0], sizes = [40, 8], strides = [1, 1]} : vector<40x32xf32> to vector<40x8xf32>
    "tpu.trace_start"() <{level = 10 : i32, message = "md,nd->mn"}> : () -> ()
    %cst_22 = arith.constant dense<0.000000e+00> : vector<40x40xf32>
    %51 = tpu.matmul %48, %49, %cst_22 {dimension_numbers = #tpu.dot_dimension_numbers<[1], [1], [0], [0], [0, 0, 1, 0], [], []>} : vector<40x8xf32>, vector<40x8xf32>, vector<40x40xf32> -> vector<40x40xf32>
    "tpu.trace_stop"() : () -> ()
    %cst_23 = arith.constant 0.353553385 : f32
    %52 = vector.broadcast %cst_23 : f32 to vector<40x40xf32>
    %53 = arith.mulf %51, %52 : vector<40x40xf32>
    %54 = arith.addf %53, %45 : vector<40x40xf32>
    %cst_24 = arith.constant dense<0xFF800000> : vector<40xf32>
    %55 = vector.multi_reduction <maximumf>, %54, %cst_24 [1] : vector<40x40xf32> to vector<40xf32>
    %56 = vector.shape_cast %55 : vector<40xf32> to vector<40x1xf32>
    %57 = vector.broadcast %56 : vector<40x1xf32> to vector<40x40xf32>
    %58 = arith.subf %54, %57 : vector<40x40xf32>
    %59 = math.exp %58 : vector<40x40xf32>
    %cst_25 = arith.constant dense<0.000000e+00> : vector<40xf32>
    %60 = vector.multi_reduction <add>, %59, %cst_25 [1] : vector<40x40xf32> to vector<40xf32>
    %61 = vector.shape_cast %60 : vector<40xf32> to vector<40x1xf32>
    %62 = tpu.reciprocal %61 {approx = true} : vector<40x1xf32> -> vector<40x1xf32>
    %63 = vector.broadcast %62 : vector<40x1xf32> to vector<40x40xf32>
    %64 = arith.mulf %59, %63 : vector<40x40xf32>
    %cst_26 = arith.constant dense<0.000000e+00> : vector<40x8xf32>
    %65 = tpu.matmul %64, %50, %cst_26 {dimension_numbers = #tpu.dot_dimension_numbers<[1], [0], [0], [1], [0, 0, 1, 1], [], []>} : vector<40x40xf32>, vector<40x8xf32>, vector<40x8xf32> -> vector<40x8xf32>
    %66 = vector.extract_strided_slice %46 {offsets = [0, 0], sizes = [8, 32], strides = [1, 1]} : vector<32x32xf32> to vector<8x32xf32>
    %cst_27 = arith.constant dense<0.000000e+00> : vector<40x32xf32>
    %67 = tpu.matmul %65, %66, %cst_27 {dimension_numbers = #tpu.dot_dimension_numbers<[1], [0], [0], [1], [0, 0, 1, 1], [], []>} : vector<40x8xf32>, vector<8x32xf32>, vector<40x32xf32> -> vector<40x32xf32>
    %68 = arith.addf %47, %67 : vector<40x32xf32>
    %69 = vector.extract_strided_slice %42 {offsets = [0, 8], sizes = [40, 8], strides = [1, 1]} : vector<40x32xf32> to vector<40x8xf32>
    %70 = vector.extract_strided_slice %43 {offsets = [0, 8], sizes = [40, 8], strides = [1, 1]} : vector<40x32xf32> to vector<40x8xf32>
    %71 = vector.extract_strided_slice %44 {offsets = [0, 8], sizes = [40, 8], strides = [1, 1]} : vector<40x32xf32> to vector<40x8xf32>
    "tpu.trace_start"() <{level = 10 : i32, message = "md,nd->mn"}> : () -> ()
    %cst_28 = arith.constant dense<0.000000e+00> : vector<40x40xf32>
    %72 = tpu.matmul %69, %70, %cst_28 {dimension_numbers = #tpu.dot_dimension_numbers<[1], [1], [0], [0], [0, 0, 1, 0], [], []>} : vector<40x8xf32>, vector<40x8xf32>, vector<40x40xf32> -> vector<40x40xf32>
    "tpu.trace_stop"() : () -> ()
    %cst_29 = arith.constant 0.353553385 : f32
    %73 = vector.broadcast %cst_29 : f32 to vector<40x40xf32>
    %74 = arith.mulf %72, %73 : vector<40x40xf32>
    %75 = arith.addf %74, %45 : vector<40x40xf32>
    %cst_30 = arith.constant dense<0xFF800000> : vector<40xf32>
    %76 = vector.multi_reduction <maximumf>, %75, %cst_30 [1] : vector<40x40xf32> to vector<40xf32>
    %77 = vector.shape_cast %76 : vector<40xf32> to vector<40x1xf32>
    %78 = vector.broadcast %77 : vector<40x1xf32> to vector<40x40xf32>
    %79 = arith.subf %75, %78 : vector<40x40xf32>
    %80 = math.exp %79 : vector<40x40xf32>
    %cst_31 = arith.constant dense<0.000000e+00> : vector<40xf32>
    %81 = vector.multi_reduction <add>, %80, %cst_31 [1] : vector<40x40xf32> to vector<40xf32>
    %82 = vector.shape_cast %81 : vector<40xf32> to vector<40x1xf32>
    %83 = tpu.reciprocal %82 {approx = true} : vector<40x1xf32> -> vector<40x1xf32>
    %84 = vector.broadcast %83 : vector<40x1xf32> to vector<40x40xf32>
    %85 = arith.mulf %80, %84 : vector<40x40xf32>
    %cst_32 = arith.constant dense<0.000000e+00> : vector<40x8xf32>
    %86 = tpu.matmul %85, %71, %cst_32 {dimension_numbers = #tpu.dot_dimension_numbers<[1], [0], [0], [1], [0, 0, 1, 1], [], []>} : vector<40x40xf32>, vector<40x8xf32>, vector<40x8xf32> -> vector<40x8xf32>
    %87 = vector.extract_strided_slice %46 {offsets = [8, 0], sizes = [8, 32], strides = [1, 1]} : vector<32x32xf32> to vector<8x32xf32>
    %cst_33 = arith.constant dense<0.000000e+00> : vector<40x32xf32>
    %88 = tpu.matmul %86, %87, %cst_33 {dimension_numbers = #tpu.dot_dimension_numbers<[1], [0], [0], [1], [0, 0, 1, 1], [], []>} : vector<40x8xf32>, vector<8x32xf32>, vector<40x32xf32> -> vector<40x32xf32>
    %89 = arith.addf %68, %88 : vector<40x32xf32>
    %90 = vector.extract_strided_slice %42 {offsets = [0, 16], sizes = [40, 8], strides = [1, 1]} : vector<40x32xf32> to vector<40x8xf32>
    %91 = vector.extract_strided_slice %43 {offsets = [0, 16], sizes = [40, 8], strides = [1, 1]} : vector<40x32xf32> to vector<40x8xf32>
    %92 = vector.extract_strided_slice %44 {offsets = [0, 16], sizes = [40, 8], strides = [1, 1]} : vector<40x32xf32> to vector<40x8xf32>
    "tpu.trace_start"() <{level = 10 : i32, message = "md,nd->mn"}> : () -> ()
    %cst_34 = arith.constant dense<0.000000e+00> : vector<40x40xf32>
    %93 = tpu.matmul %90, %91, %cst_34 {dimension_numbers = #tpu.dot_dimension_numbers<[1], [1], [0], [0], [0, 0, 1, 0], [], []>} : vector<40x8xf32>, vector<40x8xf32>, vector<40x40xf32> -> vector<40x40xf32>
    "tpu.trace_stop"() : () -> ()
    %cst_35 = arith.constant 0.353553385 : f32
    %94 = vector.broadcast %cst_35 : f32 to vector<40x40xf32>
    %95 = arith.mulf %93, %94 : vector<40x40xf32>
    %96 = arith.addf %95, %45 : vector<40x40xf32>
    %cst_36 = arith.constant dense<0xFF800000> : vector<40xf32>
    %97 = vector.multi_reduction <maximumf>, %96, %cst_36 [1] : vector<40x40xf32> to vector<40xf32>
    %98 = vector.shape_cast %97 : vector<40xf32> to vector<40x1xf32>
    %99 = vector.broadcast %98 : vector<40x1xf32> to vector<40x40xf32>
    %100 = arith.subf %96, %99 : vector<40x40xf32>
    %101 = math.exp %100 : vector<40x40xf32>
    %cst_37 = arith.constant dense<0.000000e+00> : vector<40xf32>
    %102 = vector.multi_reduction <add>, %101, %cst_37 [1] : vector<40x40xf32> to vector<40xf32>
    %103 = vector.shape_cast %102 : vector<40xf32> to vector<40x1xf32>
    %104 = tpu.reciprocal %103 {approx = true} : vector<40x1xf32> -> vector<40x1xf32>
    %105 = vector.broadcast %104 : vector<40x1xf32> to vector<40x40xf32>
    %106 = arith.mulf %101, %105 : vector<40x40xf32>
    %cst_38 = arith.constant dense<0.000000e+00> : vector<40x8xf32>
    %107 = tpu.matmul %106, %92, %cst_38 {dimension_numbers = #tpu.dot_dimension_numbers<[1], [0], [0], [1], [0, 0, 1, 1], [], []>} : vector<40x40xf32>, vector<40x8xf32>, vector<40x8xf32> -> vector<40x8xf32>
    %108 = vector.extract_strided_slice %46 {offsets = [16, 0], sizes = [8, 32], strides = [1, 1]} : vector<32x32xf32> to vector<8x32xf32>
    %cst_39 = arith.constant dense<0.000000e+00> : vector<40x32xf32>
    %109 = tpu.matmul %107, %108, %cst_39 {dimension_numbers = #tpu.dot_dimension_numbers<[1], [0], [0], [1], [0, 0, 1, 1], [], []>} : vector<40x8xf32>, vector<8x32xf32>, vector<40x32xf32> -> vector<40x32xf32>
    %110 = arith.addf %89, %109 : vector<40x32xf32>
    %111 = vector.extract_strided_slice %42 {offsets = [0, 24], sizes = [40, 8], strides = [1, 1]} : vector<40x32xf32> to vector<40x8xf32>
    %112 = vector.extract_strided_slice %43 {offsets = [0, 24], sizes = [40, 8], strides = [1, 1]} : vector<40x32xf32> to vector<40x8xf32>
    %113 = vector.extract_strided_slice %44 {offsets = [0, 24], sizes = [40, 8], strides = [1, 1]} : vector<40x32xf32> to vector<40x8xf32>
    "tpu.trace_start"() <{level = 10 : i32, message = "md,nd->mn"}> : () -> ()
    %cst_40 = arith.constant dense<0.000000e+00> : vector<40x40xf32>
    %114 = tpu.matmul %111, %112, %cst_40 {dimension_numbers = #tpu.dot_dimension_numbers<[1], [1], [0], [0], [0, 0, 1, 0], [], []>} : vector<40x8xf32>, vector<40x8xf32>, vector<40x40xf32> -> vector<40x40xf32>
    "tpu.trace_stop"() : () -> ()
    %cst_41 = arith.constant 0.353553385 : f32
    %115 = vector.broadcast %cst_41 : f32 to vector<40x40xf32>
    %116 = arith.mulf %114, %115 : vector<40x40xf32>
    %117 = arith.addf %116, %45 : vector<40x40xf32>
    %cst_42 = arith.constant dense<0xFF800000> : vector<40xf32>
    %118 = vector.multi_reduction <maximumf>, %117, %cst_42 [1] : vector<40x40xf32> to vector<40xf32>
    %119 = vector.shape_cast %118 : vector<40xf32> to vector<40x1xf32>
    %120 = vector.broadcast %119 : vector<40x1xf32> to vector<40x40xf32>
    %121 = arith.subf %117, %120 : vector<40x40xf32>
    %122 = math.exp %121 : vector<40x40xf32>
    %cst_43 = arith.constant dense<0.000000e+00> : vector<40xf32>
    %123 = vector.multi_reduction <add>, %122, %cst_43 [1] : vector<40x40xf32> to vector<40xf32>
    %124 = vector.shape_cast %123 : vector<40xf32> to vector<40x1xf32>
    %125 = tpu.reciprocal %124 {approx = true} : vector<40x1xf32> -> vector<40x1xf32>
    %126 = vector.broadcast %125 : vector<40x1xf32> to vector<40x40xf32>
    %127 = arith.mulf %122, %126 : vector<40x40xf32>
    %cst_44 = arith.constant dense<0.000000e+00> : vector<40x8xf32>
    %128 = tpu.matmul %127, %113, %cst_44 {dimension_numbers = #tpu.dot_dimension_numbers<[1], [0], [0], [1], [0, 0, 1, 1], [], []>} : vector<40x40xf32>, vector<40x8xf32>, vector<40x8xf32> -> vector<40x8xf32>
    %129 = vector.extract_strided_slice %46 {offsets = [24, 0], sizes = [8, 32], strides = [1, 1]} : vector<32x32xf32> to vector<8x32xf32>
    %cst_45 = arith.constant dense<0.000000e+00> : vector<40x32xf32>
    %130 = tpu.matmul %128, %129, %cst_45 {dimension_numbers = #tpu.dot_dimension_numbers<[1], [0], [0], [1], [0, 0, 1, 1], [], []>} : vector<40x8xf32>, vector<8x32xf32>, vector<40x32xf32> -> vector<40x32xf32>
    %131 = arith.addf %110, %130 : vector<40x32xf32>
    %132 = vector.broadcast %4 : vector<1x32xf32> to vector<40x32xf32>
    %133 = arith.addf %131, %132 : vector<40x32xf32>
    %134 = arith.addf %36, %133 : vector<40x32xf32>
    %cst_46 = arith.constant dense<0.000000e+00> : vector<40xf32>
    %135 = vector.multi_reduction <add>, %134, %cst_46 [1] : vector<40x32xf32> to vector<40xf32>
    %136 = vector.shape_cast %135 : vector<40xf32> to vector<40x1xf32>
    %cst_47 = arith.constant 3.200000e+01 : f32
    %137 = vector.broadcast %cst_47 : f32 to vector<40x1xf32>
    %138 = arith.divf %136, %137 : vector<40x1xf32>
    %139 = vector.broadcast %138 : vector<40x1xf32> to vector<40x32xf32>
    %140 = arith.subf %134, %139 : vector<40x32xf32>
    %141 = arith.mulf %140, %140 : vector<40x32xf32>
    %cst_48 = arith.constant dense<0.000000e+00> : vector<40xf32>
    %142 = vector.multi_reduction <add>, %141, %cst_48 [1] : vector<40x32xf32> to vector<40xf32>
    %143 = vector.shape_cast %142 : vector<40xf32> to vector<40x1xf32>
    %cst_49 = arith.constant 3.200000e+01 : f32
    %144 = vector.broadcast %cst_49 : f32 to vector<40x1xf32>
    %145 = arith.divf %143, %144 : vector<40x1xf32>
    %cst_50 = arith.constant 9.99999974E-6 : f32
    %146 = vector.broadcast %cst_50 : f32 to vector<40x1xf32>
    %147 = arith.addf %145, %146 : vector<40x1xf32>
    %148 = math.rsqrt %147 : vector<40x1xf32>
    %149 = vector.broadcast %148 : vector<40x1xf32> to vector<40x32xf32>
    %150 = arith.mulf %140, %149 : vector<40x32xf32>
    %151 = vector.broadcast %5 : vector<1x32xf32> to vector<40x32xf32>
    %152 = arith.mulf %150, %151 : vector<40x32xf32>
    %153 = vector.broadcast %6 : vector<1x32xf32> to vector<40x32xf32>
    %154 = arith.addf %152, %153 : vector<40x32xf32>
    %c0_51 = arith.constant 0 : index
    %c0_52 = arith.constant 0 : index
    %155 = vector.load %arg8[%c0_51, %c0_52] : memref<32x256xf32, #tpu.memory_space<vmem>>, vector<32x256xf32>
    %cst_53 = arith.constant dense<0.000000e+00> : vector<40x256xf32>
    %156 = tpu.matmul %154, %155, %cst_53 {dimension_numbers = #tpu.dot_dimension_numbers<[1], [0], [0], [1], [0, 0, 1, 1], [], []>} : vector<40x32xf32>, vector<32x256xf32>, vector<40x256xf32> -> vector<40x256xf32>
    %c0_54 = arith.constant 0 : index
    %c0_55 = arith.constant 0 : index
    %157 = vector.load %arg11[%c0_54, %c0_55] : memref<1x256xf32, #tpu.memory_space<vmem>>, vector<1x256xf32>
    %158 = vector.broadcast %157 : vector<1x256xf32> to vector<40x256xf32>
    %159 = arith.addf %156, %158 : vector<40x256xf32>
    %cst_56 = arith.constant 0.000000e+00 : f32
    %160 = vector.broadcast %cst_56 : f32 to vector<40x256xf32>
    %161 = arith.maximumf %159, %160 : vector<40x256xf32>
    %c0_57 = arith.constant 0 : index
    %c0_58 = arith.constant 0 : index
    %162 = vector.load %arg9[%c0_57, %c0_58] : memref<256x32xf32, #tpu.memory_space<vmem>>, vector<256x32xf32>
    %cst_59 = arith.constant dense<0.000000e+00> : vector<40x32xf32>
    %163 = tpu.matmul %161, %162, %cst_59 {dimension_numbers = #tpu.dot_dimension_numbers<[1], [0], [0], [1], [0, 0, 1, 1], [], []>} : vector<40x256xf32>, vector<256x32xf32>, vector<40x32xf32> -> vector<40x32xf32>
    %164 = vector.broadcast %7 : vector<1x32xf32> to vector<40x32xf32>
    %165 = arith.addf %163, %164 : vector<40x32xf32>
    %166 = arith.addf %154, %165 : vector<40x32xf32>
    %cst_60 = arith.constant dense<0.000000e+00> : vector<40xf32>
    %167 = vector.multi_reduction <add>, %166, %cst_60 [1] : vector<40x32xf32> to vector<40xf32>
    %168 = vector.shape_cast %167 : vector<40xf32> to vector<40x1xf32>
    %cst_61 = arith.constant 3.200000e+01 : f32
    %169 = vector.broadcast %cst_61 : f32 to vector<40x1xf32>
    %170 = arith.divf %168, %169 : vector<40x1xf32>
    %171 = vector.broadcast %170 : vector<40x1xf32> to vector<40x32xf32>
    %172 = arith.subf %166, %171 : vector<40x32xf32>
    %173 = arith.mulf %172, %172 : vector<40x32xf32>
    %cst_62 = arith.constant dense<0.000000e+00> : vector<40xf32>
    %174 = vector.multi_reduction <add>, %173, %cst_62 [1] : vector<40x32xf32> to vector<40xf32>
    %175 = vector.shape_cast %174 : vector<40xf32> to vector<40x1xf32>
    %cst_63 = arith.constant 3.200000e+01 : f32
    %176 = vector.broadcast %cst_63 : f32 to vector<40x1xf32>
    %177 = arith.divf %175, %176 : vector<40x1xf32>
    %cst_64 = arith.constant 9.99999974E-6 : f32
    %178 = vector.broadcast %cst_64 : f32 to vector<40x1xf32>
    %179 = arith.addf %177, %178 : vector<40x1xf32>
    %180 = math.rsqrt %179 : vector<40x1xf32>
    %181 = vector.broadcast %180 : vector<40x1xf32> to vector<40x32xf32>
    %182 = arith.mulf %172, %181 : vector<40x32xf32>
    %183 = vector.broadcast %8 : vector<1x32xf32> to vector<40x32xf32>
    %184 = arith.mulf %182, %183 : vector<40x32xf32>
    %185 = vector.broadcast %9 : vector<1x32xf32> to vector<40x32xf32>
    %186 = arith.addf %184, %185 : vector<40x32xf32>
    %c0_65 = arith.constant 0 : index
    %c0_66 = arith.constant 0 : index
    %187 = vector.load %arg4[%c0_65, %c0_66] : memref<8x40xf32, #tpu.memory_space<vmem>>, vector<8x40xf32>
    %cst_67 = arith.constant dense<0.000000e+00> : vector<8x32xf32>
    %188 = tpu.matmul %187, %186, %cst_67 {dimension_numbers = #tpu.dot_dimension_numbers<[1], [0], [0], [1], [0, 0, 1, 1], [], []>} : vector<8x40xf32>, vector<40x32xf32>, vector<8x32xf32> -> vector<8x32xf32>
    %c0_68 = arith.constant 0 : index
    %c0_69 = arith.constant 0 : index
    %189 = vector.load %arg13[%c0_68, %c0_69] : memref<8x32xf32, #tpu.memory_space<vmem>>, vector<8x32xf32>
    tpu.vector_store %arg13[%c0_68, %c0_69], %188 {strides = array<i32>} : memref<8x32xf32, #tpu.memory_space<vmem>>, vector<8x32xf32>,
    return
  }
  func.func @transform_0(%arg0: i32) -> (i32, i32) {
    %c0_i32 = arith.constant 0 : i32
    %c0_i32_0 = arith.constant 0 : i32
    return %arg0, %c0_i32 : i32, i32
  }
  func.func @transform_1(%arg0: i32) -> (i32, i32) {
    %c0_i32 = arith.constant 0 : i32
    %c0_i32_0 = arith.constant 0 : i32
    return %arg0, %c0_i32 : i32, i32
  }
  func.func @transform_2(%arg0: i32) -> (i32, i32) {
    %c0_i32 = arith.constant 0 : i32
    %c0_i32_0 = arith.constant 0 : i32
    %c0_i32_1 = arith.constant 0 : i32
    return %c0_i32, %c0_i32_0 : i32, i32
  }
  func.func @transform_3(%arg0: i32) -> (i32, i32) {
    %c0_i32 = arith.constant 0 : i32
    %c0_i32_0 = arith.constant 0 : i32
    %c0_i32_1 = arith.constant 0 : i32
    return %c0_i32, %c0_i32_0 : i32, i32
  }
  func.func @transform_4(%arg0: i32) -> (i32, i32) {
    %c0_i32 = arith.constant 0 : i32
    %c0_i32_0 = arith.constant 0 : i32
    %c0_i32_1 = arith.constant 0 : i32
    return %c0_i32, %c0_i32_0 : i32, i32
  }
  func.func @transform_5(%arg0: i32) -> (i32, i32) {
    %c0_i32 = arith.constant 0 : i32
    %c0_i32_0 = arith.constant 0 : i32
    %c0_i32_1 = arith.constant 0 : i32
    return %c0_i32, %c0_i32_0 : i32, i32
  }
  func.func @transform_6(%arg0: i32) -> (i32, i32) {
    %c0_i32 = arith.constant 0 : i32
    %c0_i32_0 = arith.constant 0 : i32
    %c0_i32_1 = arith.constant 0 : i32
    return %c0_i32, %c0_i32_0 : i32, i32
  }
  func.func @transform_7(%arg0: i32) -> (i32, i32) {
    %c0_i32 = arith.constant 0 : i32
    %c0_i32_0 = arith.constant 0 : i32
    %c0_i32_1 = arith.constant 0 : i32
    return %c0_i32, %c0_i32_0 : i32, i32
  }
  func.func @transform_8(%arg0: i32) -> (i32, i32) {
    %c0_i32 = arith.constant 0 : i32
    %c0_i32_0 = arith.constant 0 : i32
    %c0_i32_1 = arith.constant 0 : i32
    return %c0_i32, %c0_i32_0 : i32, i32
  }
  func.func @transform_9(%arg0: i32) -> (i32, i32) {
    %c0_i32 = arith.constant 0 : i32
    %c0_i32_0 = arith.constant 0 : i32
    %c0_i32_1 = arith.constant 0 : i32
    return %c0_i32, %c0_i32_0 : i32, i32
  }
  func.func @transform_10(%arg0: i32) -> (i32, i32) {
    %c0_i32 = arith.constant 0 : i32
    %c0_i32_0 = arith.constant 0 : i32
    %c0_i32_1 = arith.constant 0 : i32
    return %c0_i32, %c0_i32_0 : i32, i32
  }
  func.func @transform_11(%arg0: i32) -> (i32, i32) {
    %c0_i32 = arith.constant 0 : i32
    %c0_i32_0 = arith.constant 0 : i32
    %c0_i32_1 = arith.constant 0 : i32
    return %c0_i32, %c0_i32_0 : i32, i32
  }
  func.func @transform_12(%arg0: i32) -> (i32, i32) {
    %c0_i32 = arith.constant 0 : i32
    %c0_i32_0 = arith.constant 0 : i32
    return %arg0, %c0_i32 : i32, i32
  }
}

</mosaic_0001>

<bundles_post_ra>
// kernel: tpu_custom_call.1
= control target key start
LH: loop header
LB: loop body
LE: loop exit
PB: predicated region body
PF: predicated region fallthrough
CT: control target
= control target key end

     0   :  { %s5157_s0 = inlined_call_operand.vmem [shape: f32[80,16], index: 0, kind: input, shape index: {}]   ;;  %s5158_s1 = inlined_call_operand.vmem [shape: f32[80,32], index: 1, kind: input, shape index: {}]   ;;  %s5159_s2 = inlined_call_operand.vmem [shape: f32[40,40], index: 2, kind: input, shape index: {}]   ;;  %s5160_s3 = inlined_call_operand.vmem [shape: f32[8,40], index: 3, kind: input, shape index: {}]   ;;  %s5161_s4 = inlined_call_operand.vmem [shape: f32[16,32], index: 4, kind: input, shape index: {}]   ;;  %s5162_s5 = inlined_call_operand.vmem [shape: f32[32,96], index: 5, kind: input, shape index: {}]   ;;  %s5163_s6 = inlined_call_operand.vmem [shape: f32[32,32], index: 6, kind: input, shape index: {}]   ;;  %s5164_s7 = inlined_call_operand.vmem [shape: f32[32,256], index: 7, kind: input, shape index: {}]   ;;  %s5165_s8 = inlined_call_operand.vmem [shape: f32[256,32], index: 8, kind: input, shape index: {}]   ;;  %s5166_s9 = inlined_call_operand.vmem [shape: f32[1,96], index: 9, kind: input, shape index: {}]   ;;  %s5167_s10 = inlined_call_operand.vmem [shape: f32[1,256], index: 10, kind: input, shape index: {}]   ;;  %s5168_s11 = inlined_call_operand.vmem [shape: f32[9,32], index: 11, kind: input, shape index: {}]   ;;  %s5169_s12 = inlined_call_operand.hbm [shape: f32[16,32], index: 12, kind: output, shape index: {}]  }
   0x1   :  { %5171 = sst [smem:[#allocation5_spill]] %s5157_s0 }
   0x2   :  { %5172 = sst [smem:[#allocation6_spill]] %s5158_s1 }
   0x3   :  { %17 = vsyncpa [#allocation3], 0 }
   0x4   :  { %19 = vsyncpa [#allocation3 + $0x1], 0  ;;  %s4188_s21 = smov 0   ;;  %s4190_s22 = smov 0  }
   0x5   :  { %s4192_s23 = smov 0   ;;  %s4194_s24 = smov 0  }
   0x6 LB: > { %s4209_s25 = sadd.s32 4294967295, %s4106_s24   ;;  %s3073_s26 = sadd.s32 4294967294, %s4106_s24   ;;  %s4106_s24 = sphi %s4194_s24, %s5183_s24   ;;  %s4102_s23 = sphi %s4192_s23, %s5182_s23   ;;  %s4098_s22 = sphi %s4190_s22, %s5181_s22   ;;  %s4094_s21 = sphi %s4188_s21, %s5180_s21  }
   0x7   : > { %s4213_s27 = sadd.s32 1, %s4106_s24   ;;  %s294_s28 = sadd.s32 1, %s4102_s23 }
   0x8   : > { %s291_s29 = ssub.s32 %s4106_s24, %s4213_s27  ;;  %p304_p0 = scmp.ne.s32.totalorder %s4102_s23, %s4098_s22 }
   0x9   : > { %p292_p1 = scmp.eq.s32.totalorder %s291_s29, 0  ;;  %p305_p2 = scmp.eq.s32.totalorder %s4209_s25, 1 }
   0xa   : > { %p310_p3 = scmp.ne.s32.totalorder %s4098_s22, %s4094_s21  ;;  %p311_p4 = scmp.eq.s32.totalorder %s3073_s26, 1 }
   0xb   : > { %s4224_s30 = scalar_select %p292_p1, %s4102_s23, %s294_s28  }
   0xc   : > { %p4226_p5 = por %p305_p2, %p304_p0  ;;  %p4230_p6 = por %p311_p4, %p310_p3 }
   0xd   : > { %p3076_p7 = scmp.ge.s32.totalorder %s4106_s24, 1  ;;  %p377_p8 = scmp.lt.s32.totalorder %s4106_s24, 3 }
   0xf   : > { %p378_p9 = pnand %p3076_p7, %p377_p8 }
  0x10   : > { %v443_v0 = vld [vmem:[%s5161_s4] sm:$0xff] (!%p378_p9)  ;;  %v444_v1 = vld [vmem:[%s5161_s4 + $0x8] sm:$0xff] (!%p378_p9)  ;;  %s424_s19 = smul.u32 (!%p378_p9), 5, %s4209_s25  ;;  %v4108_v2 = vmov (!%p378_p9), 0.0|0.0   ;;  %vm4109_vm0 = vmmov (!%p378_p9), 0   ;;  %v4110_v4 = vmov (!%p378_p9), 0.0   ;;  %v445_v10 = vlaneseq (!%p378_p9) }
  0x11   : > { %381 = sbr.rel (%p378_p9) target bundleno = 4651 (0x122b), region = 68  ;;  %3678 = vmatprep.subr.bf16.mxu0 (!%p378_p9), %v4108_v2  ;;  %v3679_v3 = vpack.c.bf16 (!%p378_p9), %v444_v1, %v443_v0  ;;  %3359 = vmatprep.mubr.msk.f32.mxu0 (!%p378_p9), %vm4109_vm0, %v4110_v4  ;;  %vm449_vm1 = vcmask (!%p378_p9), 130048   ;;  %s5175_s0 = sld [smem:[#allocation5_spill]] (!%p378_p9)  ;;  %v4274_v13 = vld [vmem:[%s5168_s11] sm:$0xff] (!%p378_p9)  ;;  %vm555_vm2 = vcmask (!%p378_p9), 261120   ;;  %v651_v61 = vld [vmem:[%s5162_s5 + $0x8] sm:$0xff] (!%p378_p9) }
  0x12   : > { %p425_p10 = scmp.lt.s32.totalorder (!%p378_p9), %s424_s19, 9  ;;  %3681 = vmatprep.subr.bf16.mxu1 (!%p378_p9), %v4108_v2  ;;  %3382 = vmatprep.mubr.msk.f32.mxu1 (!%p378_p9), %vm4109_vm0, %v4110_v4  ;;  %v4268_v11 = vshrl.u32 (!%p378_p9), %v445_v10, 7  ;;  %v650_v60 = vld [vmem:[%s5162_s5] sm:$0xff] (!%p378_p9)  ;;  %v652_v63 = vld [vmem:[%s5162_s5 + $0x10] sm:$0xff] (!%p378_p9)  ;;  %v653_v0 = vld [vmem:[%s5162_s5 + $0x18] sm:$0xff] (!%p378_p9)  ;;  %s5177_s1 = sld [smem:[#allocation6_spill]] (!%p378_p9) }
  0x13   : > { %3680 = vmatpush3.bf16.msra.mxu0 (!%p378_p9), %v3679_v3  ;;  %v3682_v62 = vpack.c.bf16 (!%p378_p9), %v651_v61, %v650_v60  ;;  %v3685_v1 = vpack.c.bf16 (!%p378_p9), %v653_v0, %v652_v63  ;;  %s4112_s15 = smov (!%p378_p9), 88   ;;  %s4113_s16 = smov (!%p378_p9), 120   ;;  %vm790_vm3 = vcmask (!%p378_p9), 64512   ;;  %vm911_vm5 = vcmask (!%p378_p9), 326656  }
  0x14   : > { %3687 = vmatprep.subr.bf16.mxu0 (!%p378_p9), %v4108_v2  ;;  %v447_v12 = vsub.s32 (!%p378_p9), 0, %v4268_v11  ;;  %vm4405_vm4 = vmpackc.low (!%p378_p9), %vm790_vm3, %vm790_vm3  ;;  %s4114_s17 = smov (!%p378_p9), 64   ;;  %s4115_s18 = smov (!%p378_p9), 56  }
  0x15   : > { %3683 = vmatpush3.bf16.msra.mxu1 (!%p378_p9), %v3682_v62 }
  0x16   : > { %v448_v14 = vrot.slane (!%p378_p9), %v4274_v13, %v447_v12  ;;  %3684 = vmatprep.subr.bf16.mxu1 (!%p378_p9), %v4108_v2 }
  0x18   : > { %s5185_s19 = smov (!%p425_p10, %s424_s19), 9 }
  0x19   : > { %s5170_s20 = sshll.u32 %s5185_s19, 3  ;;  %3686 = vmatpush3.bf16.msra.mxu1 %v3685_v1 }
  0x1a   : > { %s428_s29 = scalar_lea.vmem %s5175_s0, %s5170_s20  ;;  %3695 = vmatprep.subr.bf16.mxu1 %v4108_v2  ;;  %s5176_s20 = sshll.u32 %s5185_s19, 3 }
  0x1b   : > { %v438_v5 = vld [vmem:[%s428_s29] sm:$0xff]  ;;  %v439_v6 = vld [vmem:[%s428_s29 + $0x8] sm:$0xff]  ;;  %v440_v7 = vld [vmem:[%s428_s29 + $0x10] sm:$0xff]  ;;  %s4329_s26 = scalar_lea.vmem %s5177_s1, %s5176_s20  ;;  %s4117_s19 = smov 112  }
  0x1c   : > { %3360 = vmatmul.mubr.msk.f32.vlgmr.msra.gmra.mrb[0].mxu0 %vm449_vm1, %v438_v5  ;;  %v441_v8 = vld [vmem:[%s428_s29 + $0x18] sm:$0xff]  ;;  %v442_v9 = vld [vmem:[%s428_s29 + $0x20] sm:$0xff]  ;;  %s4111_s29 = smov 96   ;;  %s4118_s20 = smov 48  }
  0x1d   : > { %3362 = vmatprep.mubr.msk.f32.mxu0 %vm4109_vm0, %v4110_v4 }
  0x20   : > { %3363 = vmatmul.mubr.msk.f32.gmra.mrb[2].mxu0 %vm449_vm1, %v439_v6 }
  0x21   : > { %3365 = vmatprep.mubr.msk.f32.mxu0 %vm4109_vm0, %v4110_v4 }
  0x24   : > { %3366 = vmatmul.mubr.msk.f32.gmra.mrb[4].mxu0 %vm449_vm1, %v440_v7 }
  0x25   : > { %3368 = vmatprep.mubr.msk.f32.mxu0 %vm4109_vm0, %v4110_v4 }
  0x28   : > { %3369 = vmatmul.mubr.msk.f32.gmra.mrb[6].mxu0 %vm449_vm1, %v441_v8 }
  0x29   : > { %3371 = vmatprep.mubr.msk.f32.mxu0 %vm4109_vm0, %v4110_v4 }
  0x2c   : > { %3372 = vmatmul.mubr.msk.f32.gmra.mrb[8].mxu0 %vm449_vm1, %v442_v9 }
  0x2d   : > { %3407 = vmatprep.mubr.msk.f32.mxu0 %vm4109_vm0, %v4110_v4 }
  0xef   : > { %v531_v15 = vpop.f32.mrb[0].mxu0 }
  0xf0   : > { %v532_v16 = vadd.f32 %v531_v15, %v448_v14  ;;  %v3361_v17 = vpop.f32.mrb[1].mxu0  ;;  %v624_v15 = vsub.s32 1, %v4268_v11 }
  0xf2   : > { %v556_v18 = vsel %vm555_vm2, %v532_v16, 0.0 }
  0xf3   : > { %557 = vadd.xlane.f32.xlu0 %v556_v18  ;;  %v536_v19 = vpop.f32.mrb[2].mxu0  ;;  %v633_v18 = vsub.s32 2, %v4268_v11 }
  0xf4   : > { %v537_v20 = vadd.f32 %v536_v19, %v448_v14  ;;  %v3364_v21 = vpop.f32.mrb[3].mxu0 }
  0xf6   : > { %v559_v22 = vsel %vm555_vm2, %v537_v20, 0.0 }
  0xf7   : > { %560 = vadd.xlane.f32.xlu0 %v559_v22  ;;  %v541_v23 = vpop.f32.mrb[4].mxu0 }
  0xf8   : > { %v542_v24 = vadd.f32 %v541_v23, %v448_v14  ;;  %v3367_v25 = vpop.f32.mrb[5].mxu0 }
  0xf9   : > { %v634_v25 = vrot.slane %v4274_v13, %v633_v18 }
  0xfa   : > { %v562_v26 = vsel %vm555_vm2, %v542_v24, 0.0 }
  0xfb   : > { %563 = vadd.xlane.f32.xlu1 %v562_v26  ;;  %v546_v27 = vpop.f32.mrb[6].mxu0 }
  0xfc   : > { %v547_v28 = vadd.f32 %v546_v27, %v448_v14  ;;  %v3370_v29 = vpop.f32.mrb[7].mxu0 }
  0xfe   : > { %v565_v30 = vsel %vm555_vm2, %v547_v28, 0.0 }
  0xff   : > { %566 = vadd.xlane.f32.xlu1 %v565_v30  ;;  %v551_v31 = vpop.f32.mrb[8].mxu0  ;;  %v640_v30 = vld [vmem:[%s4329_s26] sm:$0xff] }
 0x100   : > { %v552_v32 = vadd.f32 %v551_v31, %v448_v14  ;;  %v3373_v33 = vpop.f32.mrb[9].mxu0 }
 0x102   : > { %v568_v34 = vsel %vm555_vm2, %v552_v32, 0.0 }
 0x103   : > { %569 = vadd.xlane.f32.xlu0 %v568_v34 }
 0x180   : > { %v558_v35 = vpop.xlane.xlu0 %557 }
 0x181   : > { %v572_v36 = vmul.f32 0.03125, %v558_v35 }
 0x183   : > { %v577_v37 = vsub.f32 %v532_v16, %v572_v36  ;;  %v641_v36 = vld [vmem:[%s4329_s26 + $0x8] sm:$0xff] }
 0x184   : > { %v561_v38 = vpop.xlane.xlu0 %560 }
 0x185   : > { %v573_v39 = vmul.f32 0.03125, %v561_v38  ;;  %v582_v40 = vmul.f32 %v577_v37, %v577_v37 }
 0x187   : > { %v4284_v41 = vsub.f32 %v537_v20, %v573_v39  ;;  %v587_v42 = vsel %vm555_vm2, %v582_v40, 0.0  ;;  %v625_v20 = vrot.slane %v4274_v13, %v624_v15 }
 0x188   : > { %v564_v43 = vpop.xlane.xlu1 %563  ;;  %588 = vadd.xlane.f32.xlu1 %v587_v42 }
 0x189   : > { %v574_v44 = vmul.f32 0.03125, %v564_v43  ;;  %v583_v45 = vmul.f32 %v4284_v41, %v4284_v41 }
 0x18b   : > { %v4289_v46 = vsub.f32 %v542_v24, %v574_v44  ;;  %v590_v47 = vsel %vm555_vm2, %v583_v45, 0.0 }
 0x18c   : > { %v567_v48 = vpop.xlane.xlu1 %566  ;;  %591 = vadd.xlane.f32.xlu0 %v590_v47  ;;  %v643_v47 = vld [vmem:[%s4329_s26 + $0x18] sm:$0xff] }
 0x18d   : > { %v575_v49 = vmul.f32 0.03125, %v567_v48  ;;  %v584_v50 = vmul.f32 %v4289_v46, %v4289_v46 }
 0x18f   : > { %v4294_v51 = vsub.f32 %v547_v28, %v575_v49  ;;  %v593_v52 = vsel %vm555_vm2, %v584_v50, 0.0 }
 0x190   : > { %594 = vadd.xlane.f32.xlu1 %v593_v52  ;;  %v570_v53 = vpop.xlane.xlu0 %569  ;;  %v644_v52 = vld [vmem:[%s4329_s26 + $0x20] sm:$0xff] }
 0x191   : > { %v576_v54 = vmul.f32 0.03125, %v570_v53  ;;  %v585_v55 = vmul.f32 %v4294_v51, %v4294_v51 }
 0x193   : > { %v4299_v56 = vsub.f32 %v552_v32, %v576_v54  ;;  %v596_v57 = vsel %vm555_vm2, %v585_v55, 0.0 }
 0x194   : > { %597 = vadd.xlane.f32.xlu0 %v596_v57  ;;  %v3085_v57 = vld [vmem:[%s5166_s9] ss:$0 sm:$0xff] }
 0x195   : > { %v586_v58 = vmul.f32 %v4299_v56, %v4299_v56 }
 0x197   : > { %v599_v59 = vsel %vm555_vm2, %v586_v58, 0.0 }
 0x198   : > { %600 = vadd.xlane.f32.xlu1 %v599_v59 }
 0x215   : > { %v589_v3 = vpop.xlane.xlu1 %588 }
 0x216   : > { %v602_v5 = vmul.f32 0.03125, %v589_v3 }
 0x218   : > { %v607_v6 = vadd.f32 1e-05, %v602_v5 }
 0x219   : > { %v592_v7 = vpop.xlane.xlu0 %591 }
 0x21a   : > { %3928 = vrsqrt.f32 %v607_v6  ;;  %v603_v8 = vmul.f32 0.03125, %v592_v7 }
 0x21c   : > { %v608_v9 = vadd.f32 1e-05, %v603_v8 }
 0x21d   : > { %v595_v10 = vpop.xlane.xlu1 %594 }
 0x21e   : > { %3930 = vrsqrt.f32 %v608_v9  ;;  %v604_v14 = vmul.f32 0.03125, %v595_v10 }
 0x220   : > { %v609_v16 = vadd.f32 1e-05, %v604_v14 }
 0x221   : > { %v598_v17 = vpop.xlane.xlu0 %597 }
 0x222   : > { %3932 = vrsqrt.f32 %v609_v16  ;;  %v605_v19 = vmul.f32 0.03125, %v598_v17 }
 0x224   : > { %v3929_v21 = vpop.eup %3928  ;;  %v610_v22 = vadd.f32 1e-05, %v605_v19 }
 0x225   : > { %v617_v23 = vmul.f32 %v3929_v21, %v577_v37  ;;  %v601_v24 = vpop.xlane.xlu1 %600 }
 0x226   : > { %3934 = vrsqrt.f32 %v610_v22  ;;  %v606_v26 = vmul.f32 0.03125, %v601_v24 }
 0x227   : > { %v626_v27 = vmul.f32 %v625_v20, %v617_v23 }
 0x228   : > { %v3931_v28 = vpop.eup %3930  ;;  %v611_v29 = vadd.f32 1e-05, %v606_v26 }
 0x229   : > { %v635_v31 = vadd.f32 %v634_v25, %v626_v27  ;;  %v618_v32 = vmul.f32 %v3931_v28, %v4284_v41  ;;  %v642_v41 = vld [vmem:[%s4329_s26 + $0x10] sm:$0xff]  ;;  %s4116_s26 = smov 80  }
 0x22a   : > { %3936 = vrsqrt.f32 %v611_v29 }
 0x22b   : > { %v4334_v33 = vadd.f32 %v640_v30, %v635_v31  ;;  %v627_v34 = vmul.f32 %v625_v20, %v618_v32 }
 0x22c   : > { %v3933_v35 = vpop.eup %3932 }
 0x22d   : > { %v619_v37 = vmul.f32 %v3933_v35, %v4289_v46  ;;  %3383 = vmatmul.mubr.msk.f32.vlgmr.msra.gmra.mrb[0].mxu1 %vm555_vm2, %v4334_v33  ;;  %v636_v13 = vadd.f32 %v634_v25, %v627_v34 }
 0x22e   : > { %3385 = vmatprep.mubr.msk.f32.mxu1 %vm4109_vm0, %v4110_v4 }
 0x22f   : > { %v4342_v38 = vadd.f32 %v641_v36, %v636_v13  ;;  %v628_v39 = vmul.f32 %v625_v20, %v619_v37 }
 0x230   : > { %v3935_v40 = vpop.eup %3934 }
 0x231   : > { %3386 = vmatmul.mubr.msk.f32.gmra.mrb[2].mxu1 %vm555_vm2, %v4342_v38  ;;  %v637_v42 = vadd.f32 %v634_v25, %v628_v39  ;;  %v620_v43 = vmul.f32 %v3935_v40, %v4294_v51 }
 0x232   : > { %3388 = vmatprep.mubr.msk.f32.mxu1 %vm4109_vm0, %v4110_v4 }
 0x233   : > { %v4350_v44 = vadd.f32 %v642_v41, %v637_v42  ;;  %v629_v45 = vmul.f32 %v625_v20, %v620_v43  ;;  %v4463_v41 = vld [vmem:[%s5159_s2] sm:$0xff] }
 0x234   : > { %v3937_v46 = vpop.eup %3936 }
 0x235   : > { %v621_v48 = vmul.f32 %v3937_v46, %v4299_v56  ;;  %3389 = vmatmul.mubr.msk.f32.gmra.mrb[4].mxu1 %vm555_vm2, %v4350_v44  ;;  %v638_v49 = vadd.f32 %v634_v25, %v629_v45 }
 0x236   : > { %3391 = vmatprep.mubr.msk.f32.mxu1 %vm4109_vm0, %v4110_v4 }
 0x237   : > { %v4358_v50 = vadd.f32 %v643_v47, %v638_v49  ;;  %v630_v51 = vmul.f32 %v625_v20, %v621_v48  ;;  %v4471_v47 = vld [vmem:[%s5159_s2 + $0x8] sm:$0xff] }
 0x239   : > { %3392 = vmatmul.mubr.msk.f32.gmra.mrb[6].mxu1 %vm555_vm2, %v4358_v50  ;;  %v639_v53 = vadd.f32 %v634_v25, %v630_v51 }
 0x23a   : > { %3394 = vmatprep.mubr.msk.f32.mxu1 %vm4109_vm0, %v4110_v4 }
 0x23b   : > { %v4365_v54 = vadd.f32 %v644_v52, %v639_v53 }
 0x23d   : > { %3395 = vmatmul.mubr.msk.f32.gmra.mrb[8].mxu1 %vm555_vm2, %v4365_v54 }
 0x23e   : > { %3432 = vmatprep.mubr.msk.f32.mxu1 %vm4109_vm0, %v4110_v4 }
 0x300   : > { %v742_v55 = vpop.f32.mrb[0].mxu1 }
 0x301   : > { %v3384_v56 = vpop.f32.mrb[1].mxu1  ;;  %v4374_v59 = vadd.f32 %v3085_v57, %v742_v55  ;;  %v4481_v55 = vld [vmem:[%s5159_s2 + $0x10] sm:$0xff] }
 0x304   : > { %v747_v58 = vpop.f32.mrb[2].mxu1 }
 0x305   : > { %v4376_v60 = vadd.f32 %v3085_v57, %v747_v58  ;;  %v3387_v61 = vpop.f32.mrb[3].mxu1 }
 0x307   : > { %v4380_v62 = vpack.i.bf16 %v4376_v60, %v4374_v59 }
 0x308   : > { %v752_v63 = vpop.f32.mrb[4].mxu1 }
 0x309   : > { %3849 = vrot.lane.b32.xlu0 %v4380_v62, %s4111_s29  ;;  %v3390_v0 = vpop.f32.mrb[5].mxu1  ;;  %v4383_v3 = vadd.f32 %v3085_v57, %v752_v63 }
 0x30a   : > { %v4489_v0 = vld [vmem:[%s5159_s2 + $0x18] sm:$0xff] }
 0x30c   : > { %v757_v1 = vpop.f32.mrb[6].mxu1 }
 0x30d   : > { %v4385_v5 = vadd.f32 %v3085_v57, %v757_v1  ;;  %v3393_v6 = vpop.f32.mrb[7].mxu1 }
 0x30f   : > { %v4389_v7 = vpack.i.bf16 %v4385_v5, %v4383_v3 }
 0x310   : > { %v762_v8 = vpop.f32.mrb[8].mxu1 }
 0x311   : > { %3864 = vrot.lane.b32.xlu0 %v4389_v7, %s4112_s15  ;;  %3854 = vrot.lane.b32.xlu1 %v4389_v7, %s4111_s29  ;;  %v3396_v9 = vpop.f32.mrb[9].mxu1  ;;  %v4393_v10 = vadd.f32 %v3085_v57, %v762_v8 }
 0x315   : > { %1087 = vrot.lane.b32.xlu0 %v4374_v59, %s4113_s16  ;;  %788 = vrot.lane.b32.xlu1 %v4393_v10, %s4111_s29  ;;  %s4121_s29 = smov 40  }
 0x319   : > { %1091 = vrot.lane.b32.xlu0 %v4383_v3, %s4113_s16  ;;  %3859 = vrot.lane.b32.xlu1 %v4380_v62, %s4112_s15 }
 0x31d   : > { %1095 = vrot.lane.b32.xlu0 %v4393_v10, %s4113_s16  ;;  %1105 = vrot.lane.b32.xlu1 %v4393_v10, %s4112_s15 }
 0x321   : > { %1089 = vrot.lane.b32.xlu1 %v4376_v60, %s4113_s16 }
 0x325   : > { %1093 = vrot.lane.b32.xlu1 %v4385_v5, %s4113_s16 }
 0x37b   : > { %v3850_v14 = vpop.permute.xlu0 %3849 }
 0x37c   : > { %v3852_v16 = vunpack.i.h.bf16 %v3850_v14  ;;  %v3851_v17 = vunpack.i.l.bf16 %v3850_v14 }
 0x37e   : > { %v3688_v19 = vpack.c.bf16 %v3852_v16, %v3851_v17  ;;  %v4496_v16 = vld [vmem:[%s5159_s2 + $0x20] sm:$0xff] }
 0x380   : > { %3690 = vmatpush3.bf16.xpose.msk.msra.mxu0 %vm4405_vm4, %v3688_v19 }
 0x381   : > { %3691 = vmatprep.subr.bf16.mxu0 %v4108_v2 }
 0x383   : > { %v3855_v20 = vpop.permute.xlu1 %3854  ;;  %v3865_v29 = vpop.permute.xlu0 %3864 }
 0x384   : > { %v3857_v21 = vunpack.i.h.bf16 %v3855_v20  ;;  %v3856_v22 = vunpack.i.l.bf16 %v3855_v20  ;;  %v3867_v30 = vunpack.i.h.bf16 %v3865_v29  ;;  %v3866_v31 = vunpack.i.l.bf16 %v3865_v29 }
 0x386   : > { %v3692_v23 = vpack.c.bf16 %v3857_v21, %v3856_v22  ;;  %v3706_v32 = vpack.c.bf16 %v3867_v30, %v3866_v31 }
 0x387   : > { %v789_v24 = vpop.permute.xlu1 %788  ;;  %v1088_v35 = vpop.permute.xlu0 %1087 }
 0x388   : > { %3694 = vmatpush3.bf16.xpose.msk.msra.mxu0 %vm4405_vm4, %v3692_v23 }
 0x389   : > { %3405 = vmatprep.subr.mxu0 %v4110_v4 }
 0x38b   : > { %v3860_v25 = vpop.permute.xlu1 %3859  ;;  %v1092_v37 = vpop.permute.xlu0 %1091 }
 0x38c   : > { %v3862_v26 = vunpack.i.h.bf16 %v3860_v25  ;;  %v3861_v27 = vunpack.i.l.bf16 %v3860_v25 }
 0x38e   : > { %v3702_v28 = vpack.c.bf16 %v3862_v26, %v3861_v27 }
 0x38f   : > { %v1106_v34 = vpop.permute.xlu1 %1105  ;;  %v1096_v39 = vpop.permute.xlu0 %1095 }
 0x390   : > { %3406 = vmatpush3.xpose.msk.msra.mxu0 %vm790_vm3, %v789_v24 }
 0x391   : > { %3701 = vmatprep.subr.bf16.mxu0 %v4108_v2 }
 0x393   : > { %3408 = vmatmul.mubr.msk.f32.vlgmr.msra.gmra.mrb[10].mxu0 %vm790_vm3, %v4374_v59  ;;  %v1090_v36 = vpop.permute.xlu1 %1089 }
 0x394   : > { %3704 = vmatpush3.bf16.xpose.msk.msra.mxu0 %vm4405_vm4, %v3702_v28  ;;  %3410 = vmatprep.mubr.msk.f32.mxu0 %vm4109_vm0, %v4110_v4 }
 0x395   : > { %3705 = vmatprep.subr.bf16.mxu0 %v4108_v2 }
 0x397   : > { %3411 = vmatmul.mubr.msk.f32.gmra.mrb[12].mxu0 %vm790_vm3, %v4376_v60  ;;  %v1094_v13 = vpop.permute.xlu1 %1093 }
 0x398   : > { %3413 = vmatprep.mubr.msk.f32.mxu0 %vm4109_vm0, %v4110_v4 }
 0x39b   : > { %3414 = vmatmul.mubr.msk.f32.gmra.mrb[14].mxu0 %vm790_vm3, %v4383_v3 }
 0x39c   : > { %3708 = vmatpush3.bf16.xpose.msk.msra.mxu0 %vm4405_vm4, %v3706_v32  ;;  %3416 = vmatprep.mubr.msk.f32.mxu0 %vm4109_vm0, %v4110_v4 }
 0x39d   : > { %3455 = vmatprep.subr.mxu0 %v4110_v4 }
 0x39f   : > { %3417 = vmatmul.mubr.msk.f32.gmra.mrb[16].mxu0 %vm790_vm3, %v4385_v5 }
 0x3a0   : > { %3419 = vmatprep.mubr.msk.f32.mxu0 %vm4109_vm0, %v4110_v4 }
 0x3a3   : > { %3420 = vmatmul.mubr.msk.f32.gmra.mrb[18].mxu0 %vm790_vm3, %v4393_v10 }
 0x3a4   : > { %3456 = vmatpush3.xpose.msk.msra.mxu0 %vm790_vm3, %v1106_v34  ;;  %3457 = vmatprep.mubr.msk.f32.mxu0 %vm4109_vm0, %v4110_v4 }
 0x3a5   : > { %3709 = vmatprep.subr.bf16.mxu0 %v4108_v2 }
 0x3a7   : > { %3458 = vmatmul.mubr.msk.f32.vlgmr.msra.gmra.mrb[20].mxu0 %vm790_vm3, %v1088_v35 }
 0x3a8   : > { %3460 = vmatprep.mubr.msk.f32.mxu0 %vm4109_vm0, %v4110_v4 }
 0x3ab   : > { %3461 = vmatmul.mubr.msk.f32.gmra.mrb[22].mxu0 %vm790_vm3, %v1090_v36 }
 0x3ac   : > { %3463 = vmatprep.mubr.msk.f32.mxu0 %vm4109_vm0, %v4110_v4 }
 0x3af   : > { %3464 = vmatmul.mubr.msk.f32.gmra.mrb[24].mxu0 %vm790_vm3, %v1092_v37 }
 0x3b0   : > { %3466 = vmatprep.mubr.msk.f32.mxu0 %vm4109_vm0, %v4110_v4 }
 0x3b3   : > { %3467 = vmatmul.mubr.msk.f32.gmra.mrb[26].mxu0 %vm790_vm3, %v1094_v13 }
 0x3b4   : > { %3469 = vmatprep.mubr.msk.f32.mxu0 %vm4109_vm0, %v4110_v4 }
 0x3b7   : > { %3470 = vmatmul.mubr.msk.f32.gmra.mrb[28].mxu0 %vm790_vm3, %v1096_v39 }
 0x3b8   : > { %3482 = vmatprep.mubr.msk.f32.mxu0 %vm4109_vm0, %v4110_v4 }
 0x466   : > { %v877_v40 = vpop.f32.mrb[10].mxu0 }
 0x467   : > { %v901_v42 = vmul.f32 0.35355338, %v877_v40  ;;  %v3409_v43 = vpop.f32.mrb[11].mxu0 }
 0x469   : > { %v4466_v45 = vadd.f32 %v901_v42, %v4463_v41 }
 0x46a   : > { %v882_v46 = vpop.f32.mrb[12].mxu0 }
 0x46b   : > { %v902_v48 = vmul.f32 0.35355338, %v882_v46  ;;  %v3412_v49 = vpop.f32.mrb[13].mxu0  ;;  %v912_v51 = vsel %vm911_vm5, %v4466_v45, -inf }
 0x46c   : > { %913 = vmax.xlane.f32.xlu1 %v912_v51 }
 0x46d   : > { %v4476_v52 = vadd.f32 %v902_v48, %v4471_v47 }
 0x46e   : > { %v887_v53 = vpop.f32.mrb[14].mxu0 }
 0x46f   : > { %v903_v56 = vmul.f32 0.35355338, %v887_v53  ;;  %v3415_v57 = vpop.f32.mrb[15].mxu0  ;;  %v915_v58 = vsel %vm911_vm5, %v4476_v52, -inf }
 0x470   : > { %916 = vmax.xlane.f32.xlu0 %v915_v58 }
 0x471   : > { %v908_v61 = vadd.f32 %v903_v56, %v4481_v55 }
 0x472   : > { %v892_v63 = vpop.f32.mrb[16].mxu0 }
 0x473   : > { %v904_v1 = vmul.f32 0.35355338, %v892_v63  ;;  %v3418_v6 = vpop.f32.mrb[17].mxu0  ;;  %v918_v8 = vsel %vm911_vm5, %v908_v61, -inf }
 0x474   : > { %919 = vmax.xlane.f32.xlu0 %v918_v8 }
 0x475   : > { %v909_v9 = vadd.f32 %v904_v1, %v4489_v0 }
 0x476   : > { %v897_v14 = vpop.f32.mrb[18].mxu0 }
 0x477   : > { %v905_v17 = vmul.f32 0.35355338, %v897_v14  ;;  %v3421_v19 = vpop.f32.mrb[19].mxu0  ;;  %v921_v20 = vsel %vm911_vm5, %v909_v9, -inf }
 0x478   : > { %922 = vmax.xlane.f32.xlu0 %v921_v20 }
 0x479   : > { %v910_v21 = vadd.f32 %v905_v17, %v4496_v16 }
 0x47a   : > { %v1193_v22 = vpop.f32.mrb[20].mxu0 }
 0x47b   : > { %v1217_v23 = vmul.f32 0.35355338, %v1193_v22  ;;  %v3459_v24 = vpop.f32.mrb[21].mxu0  ;;  %v924_v25 = vsel %vm911_vm5, %v910_v21, -inf }
 0x47c   : > { %925 = vmax.xlane.f32.xlu1 %v924_v25 }
 0x47d   : > { %v1222_v26 = vadd.f32 %v1217_v23, %v4463_v41 }
 0x47e   : > { %v1198_v27 = vpop.f32.mrb[22].mxu0 }
 0x47f   : > { %v1218_v28 = vmul.f32 0.35355338, %v1198_v27  ;;  %v3462_v29 = vpop.f32.mrb[23].mxu0  ;;  %v1227_v30 = vsel %vm911_vm5, %v1222_v26, -inf }
 0x480   : > { %1228 = vmax.xlane.f32.xlu0 %v1227_v30 }
 0x481   : > { %v1223_v31 = vadd.f32 %v1218_v28, %v4471_v47 }
 0x482   : > { %v1203_v32 = vpop.f32.mrb[24].mxu0 }
 0x483   : > { %v1219_v34 = vmul.f32 0.35355338, %v1203_v32  ;;  %v3465_v35 = vpop.f32.mrb[25].mxu0  ;;  %v1230_v36 = vsel %vm911_vm5, %v1223_v31, -inf }
 0x484   : > { %1231 = vmax.xlane.f32.xlu1 %v1230_v36 }
 0x485   : > { %v1224_v37 = vadd.f32 %v1219_v34, %v4481_v55 }
 0x486   : > { %v1208_v13 = vpop.f32.mrb[26].mxu0 }
 0x487   : > { %v1220_v39 = vmul.f32 0.35355338, %v1208_v13  ;;  %v3468_v40 = vpop.f32.mrb[27].mxu0  ;;  %v1233_v42 = vsel %vm911_vm5, %v1224_v37, -inf }
 0x488   : > { %1234 = vmax.xlane.f32.xlu0 %v1233_v42 }
 0x489   : > { %v4508_v43 = vadd.f32 %v1220_v39, %v4489_v0 }
 0x48a   : > { %v1213_v46 = vpop.f32.mrb[28].mxu0 }
 0x48b   : > { %v3471_v48 = vpop.f32.mrb[29].mxu0  ;;  %v1236_v49 = vsel %vm911_vm5, %v4508_v43, -inf  ;;  %v1221_v51 = vmul.f32 0.35355338, %v1213_v46 }
 0x48c   : > { %1237 = vmax.xlane.f32.xlu1 %v1236_v49 }
 0x48d   : > { %v4515_v53 = vadd.f32 %v1221_v51, %v4496_v16 }
 0x48f   : > { %v1239_v56 = vsel %vm911_vm5, %v4515_v53, -inf }
 0x49d   : > { %3874 = vrot.lane.b32.xlu1 %v4389_v7, %s4114_s17 }
 0x49e   : > { %3869 = vrot.lane.b32.xlu0 %v4380_v62, %s4114_s17 }
 0x4bd   : > { %1240 = vmax.xlane.f32.xlu0 %v1239_v56 }
 0x4d3   : > { %975 = vrot.lane.b32.xlu0 %v4393_v10, %s4114_s17  ;;  %s4119_s17 = smov 104  }
 0x4f9   : > { %v914_v57 = vpop.xlane.xlu1 %913 }
 0x4fa   : > { %v927_v58 = vsub.f32 %v4466_v45, %v914_v57 }
 0x4fc   : > { %v932_v63 = vmul.f32 1.442695, %v927_v58 }
 0x4fd   : > { %v917_v1 = vpop.xlane.xlu0 %916 }
 0x4fe   : > { %3938 = vpow2.f32 %v932_v63  ;;  %v928_v6 = vsub.f32 %v4476_v52, %v917_v1 }
 0x500   : > { %v934_v8 = vmul.f32 1.442695, %v928_v6 }
 0x501   : > { %v920_v14 = vpop.xlane.xlu0 %919 }
 0x502   : > { %3940 = vpow2.f32 %v934_v8  ;;  %v929_v17 = vsub.f32 %v908_v61, %v920_v14 }
 0x504   : > { %v936_v19 = vmul.f32 1.442695, %v929_v17 }
 0x505   : > { %v923_v20 = vpop.xlane.xlu0 %922 }
 0x506   : > { %3942 = vpow2.f32 %v936_v19  ;;  %v930_v22 = vsub.f32 %v909_v9, %v923_v20 }
 0x508   : > { %v4522_v23 = vpop.eup %3938  ;;  %v938_v24 = vmul.f32 1.442695, %v930_v22 }
 0x509   : > { %v926_v25 = vpop.xlane.xlu1 %925  ;;  %v942_v45 = vsel %vm911_vm5, %v4522_v23, 0.0 }
 0x50a   : > { %3944 = vpow2.f32 %v938_v24  ;;  %v931_v27 = vsub.f32 %v910_v21, %v926_v25  ;;  %943 = vadd.xlane.f32.xlu1 %v942_v45 }
 0x50c   : > { %v4526_v28 = vpop.eup %3940  ;;  %v940_v52 = vmul.f32 1.442695, %v931_v27 }
 0x50d   : > { %v1229_v29 = vpop.xlane.xlu0 %1228  ;;  %v945_v61 = vsel %vm911_vm5, %v4526_v28, 0.0 }
 0x50e   : > { %3946 = vpow2.f32 %v940_v52  ;;  %v1242_v30 = vsub.f32 %v1222_v26, %v1229_v29  ;;  %946 = vadd.xlane.f32.xlu0 %v945_v61 }
 0x510   : > { %v4530_v9 = vpop.eup %3942  ;;  %v1247_v32 = vmul.f32 1.442695, %v1242_v30 }
 0x511   : > { %v1232_v34 = vpop.xlane.xlu1 %1231  ;;  %v948_v35 = vsel %vm911_vm5, %v4530_v9, 0.0 }
 0x512   : > { %3948 = vpow2.f32 %v1247_v32  ;;  %v1243_v21 = vsub.f32 %v1223_v31, %v1232_v34  ;;  %949 = vadd.xlane.f32.xlu1 %v948_v35 }
 0x514   : > { %v4534_v36 = vpop.eup %3944  ;;  %v1249_v13 = vmul.f32 1.442695, %v1243_v21 }
 0x515   : > { %v1235_v39 = vpop.xlane.xlu0 %1234  ;;  %v951_v40 = vsel %vm911_vm5, %v4534_v36, 0.0 }
 0x516   : > { %3950 = vpow2.f32 %v1249_v13  ;;  %v1244_v26 = vsub.f32 %v1224_v37, %v1235_v39  ;;  %952 = vadd.xlane.f32.xlu0 %v951_v40 }
 0x518   : > { %v4538_v42 = vpop.eup %3946  ;;  %v1251_v46 = vmul.f32 1.442695, %v1244_v26 }
 0x519   : > { %v3870_v48 = vpop.permute.xlu0 %3869  ;;  %v1238_v49 = vpop.xlane.xlu1 %1237  ;;  %v954_v51 = vsel %vm911_vm5, %v4538_v42, 0.0 }
 0x51a   : > { %3952 = vpow2.f32 %v1251_v46  ;;  %v3872_v31 = vunpack.i.h.bf16 %v3870_v48  ;;  %v3871_v56 = vunpack.i.l.bf16 %v3870_v48  ;;  %v1245_v57 = vsub.f32 %v4508_v43, %v1238_v49  ;;  %955 = vadd.xlane.f32.xlu1 %v954_v51 }
 0x51c   : > { %v4543_v58 = vpop.eup %3948  ;;  %v3696_v63 = vpack.c.bf16 %v3872_v31, %v3871_v56  ;;  %v1253_v1 = vmul.f32 1.442695, %v1245_v57 }
 0x51d   : > { %v3875_v37 = vpop.permute.xlu1 %3874  ;;  %v1257_v6 = vsel %vm911_vm5, %v4543_v58, 0.0 }
 0x51e   : > { %3954 = vpow2.f32 %v1253_v1  ;;  %v3877_v8 = vunpack.i.h.bf16 %v3875_v37  ;;  %v3876_v14 = vunpack.i.l.bf16 %v3875_v37  ;;  %3697 = vmatpush3.bf16.msra.mxu1 %v3696_v63  ;;  %1258 = vadd.xlane.f32.xlu1 %v1257_v6 }
 0x51f   : > { %3698 = vmatprep.subr.bf16.mxu1 %v4108_v2 }
 0x520   : > { %v4548_v17 = vpop.eup %3950  ;;  %v3699_v19 = vpack.c.bf16 %v3877_v8, %v3876_v14 }
 0x521   : > { %v1260_v43 = vsel %vm911_vm5, %v4548_v17, 0.0 }
 0x522   : > { %1261 = vadd.xlane.f32.xlu1 %v1260_v43  ;;  %3700 = vmatpush3.bf16.msra.mxu1 %v3699_v19 }
 0x523   : > { %3430 = vmatprep.subr.mxu1 %v4110_v4 }
 0x524   : > { %v4553_v20 = vpop.eup %3952 }
 0x525   : > { %v1263_v22 = vsel %vm911_vm5, %v4553_v20, 0.0 }
 0x526   : > { %1264 = vadd.xlane.f32.xlu0 %v1263_v22 }
 0x528   : > { %v4557_v24 = vpop.eup %3954 }
 0x529   : > { %v1266_v25 = vsel %vm911_vm5, %v4557_v24, 0.0 }
 0x52a   : > { %1267 = vadd.xlane.f32.xlu1 %v1266_v25 }
 0x53c   : > { %3884 = vrot.lane.b32.xlu0 %v4389_v7, %s4115_s18 }
 0x540   : > { %1290 = vrot.lane.b32.xlu0 %v4393_v10, %s4115_s18 }
 0x544   : > { %3894 = vrot.lane.b32.xlu0 %v4389_v7, %s4116_s26 }
 0x548   : > { %1612 = vrot.lane.b32.xlu0 %v4374_v59, %s4117_s19 }
 0x54a   : > { %v1241_v45 = vpop.xlane.xlu0 %1240 }
 0x54b   : > { %v1246_v27 = vsub.f32 %v4515_v53, %v1241_v45 }
 0x54c   : > { %1616 = vrot.lane.b32.xlu0 %v4383_v3, %s4117_s19 }
 0x54d   : > { %v1255_v52 = vmul.f32 1.442695, %v1246_v27 }
 0x54e   : > { %v976_v29 = vpop.permute.xlu0 %975 }
 0x54f   : > { %3956 = vpow2.f32 %v1255_v52  ;;  %3431 = vmatpush3.msra.mxu1 %v976_v29  ;;  %v771_v29 = vld [vmem:[%s5163_s6] sm:$0xff] }
 0x550   : > { %1620 = vrot.lane.b32.xlu0 %v4393_v10, %s4117_s19  ;;  %3789 = vmatprep.subr.bf16.mxu1 %v4108_v2 }
 0x559   : > { %v4569_v61 = vpop.eup %3956 }
 0x55a   : > { %v1269_v30 = vsel %vm911_vm5, %v4569_v61, 0.0 }
 0x55b   : > { %1270 = vadd.xlane.f32.xlu1 %v1269_v30 }
 0x56c   : > { %3879 = vrot.lane.b32.xlu1 %v4380_v62, %s4115_s18  ;;  %s4120_s18 = smov 72  }
 0x570   : > { %3889 = vrot.lane.b32.xlu1 %v4380_v62, %s4116_s26 }
 0x574   : > { %1630 = vrot.lane.b32.xlu1 %v4393_v10, %s4116_s26 }
 0x578   : > { %1614 = vrot.lane.b32.xlu1 %v4376_v60, %s4117_s19 }
 0x57c   : > { %1618 = vrot.lane.b32.xlu1 %v4385_v5, %s4117_s19  ;;  %s3179_s19 = sshll.u32 %s4209_s25, 7  ;;  %s4122_s25 = smov [#allocation2]  }
 0x57d   : > { %s5114_s0 = scalar_lea.hbm %s5169_s12, %s3179_s19 }
 0x597   : > { %v944_v53 = vpop.xlane.xlu1 %943 }
 0x598   : > { %3958 = vrcp.f32 %v944_v53 }
 0x59b   : > { %v947_v32 = vpop.xlane.xlu0 %946 }
 0x59c   : > { %3960 = vrcp.f32 %v947_v32  ;;  %v772_v32 = vld [vmem:[%s5163_s6 + $0x8] sm:$0xff] }
 0x59f   : > { %v950_v34 = vpop.xlane.xlu1 %949 }
 0x5a0   : > { %3962 = vrcp.f32 %v950_v34 }
 0x5a2   : > { %v3959_v35 = vpop.eup %3958 }
 0x5a3   : > { %v962_v21 = vmul.f32 %v3959_v35, %v4522_v23  ;;  %v953_v13 = vpop.xlane.xlu0 %952 }
 0x5a4   : > { %3964 = vrcp.f32 %v953_v13 }
 0x5a5   : > { %3433 = vmatmul.mubr.msk.f32.vlgmr.msra.gmra.mrb[10].mxu1 %vm911_vm5, %v962_v21 }
 0x5a6   : > { %v3961_v39 = vpop.eup %3960  ;;  %3435 = vmatprep.mubr.msk.f32.mxu1 %vm4109_vm0, %v4110_v4 }
 0x5a7   : > { %v956_v40 = vpop.xlane.xlu1 %955  ;;  %v963_v26 = vmul.f32 %v3961_v39, %v4526_v28 }
 0x5a8   : > { %3966 = vrcp.f32 %v956_v40 }
 0x5a9   : > { %3436 = vmatmul.mubr.msk.f32.gmra.mrb[12].mxu1 %vm911_vm5, %v963_v26 }
 0x5aa   : > { %v3963_v46 = vpop.eup %3962  ;;  %3438 = vmatprep.mubr.msk.f32.mxu1 %vm4109_vm0, %v4110_v4 }
 0x5ab   : > { %v964_v23 = vmul.f32 %v3963_v46, %v4530_v9  ;;  %v1259_v9 = vpop.xlane.xlu1 %1258 }
 0x5ac   : > { %3968 = vrcp.f32 %v1259_v9 }
 0x5ad   : > { %3439 = vmatmul.mubr.msk.f32.gmra.mrb[14].mxu1 %vm911_vm5, %v964_v23 }
 0x5ae   : > { %v3965_v48 = vpop.eup %3964  ;;  %3441 = vmatprep.mubr.msk.f32.mxu1 %vm4109_vm0, %v4110_v4 }
 0x5af   : > { %v965_v49 = vmul.f32 %v3965_v48, %v4534_v36  ;;  %v1262_v31 = vpop.xlane.xlu1 %1261 }
 0x5b0   : > { %3970 = vrcp.f32 %v1262_v31 }
 0x5b1   : > { %3442 = vmatmul.mubr.msk.f32.gmra.mrb[16].mxu1 %vm911_vm5, %v965_v49 }
 0x5b2   : > { %v3967_v28 = vpop.eup %3966  ;;  %3444 = vmatprep.mubr.msk.f32.mxu1 %vm4109_vm0, %v4110_v4 }
 0x5b3   : > { %v966_v51 = vmul.f32 %v3967_v28, %v4538_v42  ;;  %v1265_v57 = vpop.xlane.xlu0 %1264 }
 0x5b4   : > { %3972 = vrcp.f32 %v1265_v57 }
 0x5b5   : > { %3445 = vmatmul.mubr.msk.f32.gmra.mrb[18].mxu1 %vm911_vm5, %v966_v51 }
 0x5b6   : > { %3485 = vmatprep.mubr.msk.f32.mxu1 %vm4109_vm0, %v4110_v4  ;;  %v3969_v43 = vpop.eup %3968 }
 0x5b7   : > { %v1268_v56 = vpop.xlane.xlu1 %1267  ;;  %v3885_v36 = vpop.permute.xlu0 %3884  ;;  %v1277_v25 = vmul.f32 %v3969_v43, %v4543_v58 }
 0x5b8   : > { %v3887_v8 = vunpack.i.h.bf16 %v3885_v36  ;;  %v3886_v14 = vunpack.i.l.bf16 %v3885_v36  ;;  %3974 = vrcp.f32 %v1268_v56 }
 0x5ba   : > { %v3713_v19 = vpack.c.bf16 %v3887_v8, %v3886_v14  ;;  %v3971_v22 = vpop.eup %3970 }
 0x5bb   : > { %v1278_v45 = vmul.f32 %v3971_v22, %v4548_v17  ;;  %v1291_v27 = vpop.permute.xlu0 %1290 }
 0x5be   : > { %v3973_v52 = vpop.eup %3972 }
 0x5bf   : > { %v1279_v58 = vmul.f32 %v3973_v52, %v4553_v20  ;;  %v3895_v28 = vpop.permute.xlu0 %3894 }
 0x5c0   : > { %v3896_v36 = vunpack.i.l.bf16 %v3895_v28 }
 0x5c2   : > { %v3975_v17 = vpop.eup %3974 }
 0x5c3   : > { %v1280_v30 = vmul.f32 %v3975_v17, %v4557_v24  ;;  %v1613_v22 = vpop.permute.xlu0 %1612 }
 0x5e8   : > { %v1271_v63 = vpop.xlane.xlu1 %1270 }
 0x5e9   : > { %3976 = vrcp.f32 %v1271_v63  ;;  %v3897_v63 = vunpack.i.h.bf16 %v3895_v28 }
 0x5ec   : > { %v3880_v1 = vpop.permute.xlu1 %3879 }
 0x5ed   : > { %v3882_v37 = vunpack.i.h.bf16 %v3880_v1  ;;  %v3881_v6 = vunpack.i.l.bf16 %v3880_v1 }
 0x5ef   : > { %v3710_v42 = vpack.c.bf16 %v3882_v37, %v3881_v6  ;;  %v3720_v6 = vpack.c.bf16 %v3897_v63, %v3896_v36 }
 0x5f0   : > { %v3890_v23 = vpop.permute.xlu1 %3889 }
 0x5f1   : > { %3711 = vmatpush3.bf16.msra.mxu0 %v3710_v42  ;;  %3792 = vmatpush3.bf16.msra.mxu1 %v3710_v42  ;;  %v3892_v48 = vunpack.i.h.bf16 %v3890_v23  ;;  %v3891_v49 = vunpack.i.l.bf16 %v3890_v23 }
 0x5f2   : > { %3712 = vmatprep.subr.bf16.mxu0 %v4108_v2  ;;  %3790 = vmatprep.subr.bf16.mxu1 %v4108_v2 }
 0x5f3   : > { %v3977_v53 = vpop.eup %3976  ;;  %v3716_v51 = vpack.c.bf16 %v3892_v48, %v3891_v49 }
 0x5f4   : > { %v1281_v20 = vmul.f32 %v3977_v53, %v4569_v61  ;;  %v1631_v43 = vpop.permute.xlu1 %1630 }
 0x5f5   : > { %3714 = vmatpush3.bf16.msra.mxu0 %v3713_v19  ;;  %3793 = vmatpush3.bf16.msra.mxu1 %v3713_v19 }
 0x5f6   : > { %3480 = vmatprep.subr.mxu0 %v4110_v4  ;;  %3791 = vmatprep.subr.mxu1 %v4110_v4 }
 0x5f9   : > { %3481 = vmatpush3.msra.mxu0 %v1291_v27  ;;  %3794 = vmatpush3.msra.mxu1 %v1291_v27 }
 0x5fa   : > { %3483 = vmatmul.mubr.msk.f32.vlgmr.msra.gmra.mrb[30].mxu0 %vm911_vm5, %v1277_v25  ;;  %3486 = vmatmul.mubr.msk.f32.vlgmr.msra.gmra.mrb[20].mxu1 %vm911_vm5, %v1278_v45  ;;  %v1615_v25 = vpop.permute.xlu1 %1614  ;;  %v1617_v45 = vpop.permute.xlu0 %1616 }
 0x5fb   : > { %3488 = vmatprep.mubr.msk.f32.mxu1 %vm4109_vm0, %v4110_v4  ;;  %3514 = vmatprep.subr.mxu1 %v4110_v4 }
 0x5fc   : > { %3515 = vmatpush3.msra.mxu1 %v771_v29  ;;  %3497 = vmatprep.subr.mxu0 %v4110_v4 }
 0x5fd   : > { %3499 = vmatprep.mubr.msk.f32.mxu0 %vm4109_vm0, %v4110_v4  ;;  %3723 = vmatprep.subr.bf16.mxu1 %v4108_v2 }
 0x5fe   : > { %3489 = vmatmul.mubr.msk.f32.gmra.mrb[22].mxu1 %vm911_vm5, %v1279_v58  ;;  %3498 = vmatpush3.msra.mxu0 %v772_v32  ;;  %v1619_v27 = vpop.permute.xlu1 %1618  ;;  %v1621_v52 = vpop.permute.xlu0 %1620 }
 0x5ff   : > { %3491 = vmatprep.mubr.msk.f32.mxu1 %vm4109_vm0, %v4110_v4  ;;  %3715 = vmatprep.subr.bf16.mxu0 %v4108_v2 }
 0x602   : > { %3492 = vmatmul.mubr.msk.f32.gmra.mrb[24].mxu1 %vm911_vm5, %v1280_v30 }
 0x603   : > { %3494 = vmatprep.mubr.msk.f32.mxu1 %vm4109_vm0, %v4110_v4 }
 0x606   : > { %3495 = vmatmul.mubr.msk.f32.gmra.mrb[26].mxu1 %vm911_vm5, %v1281_v20 }
 0x607   : > { %3516 = vmatprep.mubr.msk.f32.mxu1 %vm4109_vm0, %v4110_v4 }
 0x678   : > { %v1063_v24 = vpop.f32.mrb[10].mxu1 }
 0x679   : > { %v3434_v34 = vpop.f32.mrb[11].mxu1  ;;  %3517 = vmatmul.mubr.msk.f32.vlgmr.msra.gmra.mrb[28].mxu1 %vm790_vm3, %v1063_v24 }
 0x67a   : > { %3519 = vmatprep.mubr.msk.f32.mxu1 %vm4109_vm0, %v4110_v4 }
 0x67c   : > { %v1068_v61 = vpop.f32.mrb[12].mxu1 }
 0x67d   : > { %v3437_v35 = vpop.f32.mrb[13].mxu1  ;;  %3520 = vmatmul.mubr.msk.f32.gmra.mrb[30].mxu1 %vm790_vm3, %v1068_v61 }
 0x67e   : > { %3522 = vmatprep.mubr.msk.f32.mxu1 %vm4109_vm0, %v4110_v4 }
 0x680   : > { %v1073_v21 = vpop.f32.mrb[14].mxu1 }
 0x681   : > { %v3440_v13 = vpop.f32.mrb[15].mxu1  ;;  %3523 = vmatmul.mubr.msk.f32.gmra.mrb[32].mxu1 %vm790_vm3, %v1073_v21 }
 0x682   : > { %3525 = vmatprep.mubr.msk.f32.mxu1 %vm4109_vm0, %v4110_v4 }
 0x684   : > { %v1078_v39 = vpop.f32.mrb[16].mxu1 }
 0x685   : > { %v3443_v40 = vpop.f32.mrb[17].mxu1  ;;  %3526 = vmatmul.mubr.msk.f32.gmra.mrb[34].mxu1 %vm790_vm3, %v1078_v39 }
 0x686   : > { %3528 = vmatprep.mubr.msk.f32.mxu1 %vm4109_vm0, %v4110_v4 }
 0x688   : > { %v1083_v26 = vpop.f32.mrb[18].mxu1 }
 0x689   : > { %v3446_v46 = vpop.f32.mrb[19].mxu1  ;;  %3529 = vmatmul.mubr.msk.f32.gmra.mrb[36].mxu1 %vm790_vm3, %v1083_v26 }
 0x68a   : > { %3566 = vmatprep.mubr.msk.f32.mxu1 %vm4109_vm0, %v4110_v4 }
 0x6cd   : > { %v1378_v9 = vpop.f32.mrb[30].mxu0  ;;  %v1383_v31 = vpop.f32.mrb[20].mxu1 }
 0x6ce   : > { %v3484_v56 = vpop.f32.mrb[31].mxu0  ;;  %v3487_v57 = vpop.f32.mrb[21].mxu1  ;;  %3500 = vmatmul.mubr.msk.f32.vlgmr.msra.gmra.mrb[32].mxu0 %vm790_vm3, %v1378_v9 }
 0x6cf   : > { %3718 = vmatpush3.bf16.xpose.msk.msra.mxu0 %vm4405_vm4, %v3716_v51  ;;  %3502 = vmatprep.mubr.msk.f32.mxu0 %vm4109_vm0, %v4110_v4 }
 0x6d0   : > { %3719 = vmatprep.subr.bf16.mxu0 %v4108_v2 }
 0x6d1   : > { %v1388_v1 = vpop.f32.mrb[22].mxu1 }
 0x6d2   : > { %v3490_v37 = vpop.f32.mrb[23].mxu1  ;;  %3503 = vmatmul.mubr.msk.f32.gmra.mrb[34].mxu0 %vm790_vm3, %v1383_v31 }
 0x6d3   : > { %3505 = vmatprep.mubr.msk.f32.mxu0 %vm4109_vm0, %v4110_v4 }
 0x6d5   : > { %v1393_v8 = vpop.f32.mrb[24].mxu1 }
 0x6d6   : > { %v3493_v14 = vpop.f32.mrb[25].mxu1  ;;  %3506 = vmatmul.mubr.msk.f32.gmra.mrb[36].mxu0 %vm790_vm3, %v1388_v1 }
 0x6d7   : > { %3722 = vmatpush3.bf16.xpose.msk.msra.mxu0 %vm4405_vm4, %v3720_v6  ;;  %3508 = vmatprep.mubr.msk.f32.mxu0 %vm4109_vm0, %v4110_v4 }
 0x6d8   : > { %3539 = vmatprep.subr.mxu0 %v4110_v4 }
 0x6d9   : > { %v1398_v42 = vpop.f32.mrb[26].mxu1 }
 0x6da   : > { %v3496_v19 = vpop.f32.mrb[27].mxu1  ;;  %3509 = vmatmul.mubr.msk.f32.gmra.mrb[38].mxu0 %vm790_vm3, %v1393_v8 }
 0x6db   : > { %3511 = vmatprep.mubr.msk.f32.mxu0 %vm4109_vm0, %v4110_v4 }
 0x6de   : > { %3512 = vmatmul.mubr.msk.f32.gmra.mrb[40].mxu0 %vm790_vm3, %v1398_v42 }
 0x6df   : > { %3540 = vmatpush3.xpose.msk.msra.mxu0 %vm790_vm3, %v1631_v43  ;;  %3541 = vmatprep.mubr.msk.f32.mxu0 %vm4109_vm0, %v4110_v4 }
 0x6e0   : > { %3581 = vmatprep.subr.mxu0 %v4110_v4 }
 0x6e2   : > { %3542 = vmatmul.mubr.msk.f32.vlgmr.msra.gmra.mrb[42].mxu0 %vm790_vm3, %v1613_v22 }
 0x6e3   : > { %3544 = vmatprep.mubr.msk.f32.mxu0 %vm4109_vm0, %v4110_v4 }
 0x6e6   : > { %3545 = vmatmul.mubr.msk.f32.gmra.mrb[44].mxu0 %vm790_vm3, %v1615_v25 }
 0x6e7   : > { %3547 = vmatprep.mubr.msk.f32.mxu0 %vm4109_vm0, %v4110_v4 }
 0x6ea   : > { %3548 = vmatmul.mubr.msk.f32.gmra.mrb[46].mxu0 %vm790_vm3, %v1617_v45 }
 0x6eb   : > { %3550 = vmatprep.mubr.msk.f32.mxu0 %vm4109_vm0, %v4110_v4 }
 0x6ee   : > { %3551 = vmatmul.mubr.msk.f32.gmra.mrb[48].mxu0 %vm790_vm3, %v1619_v27 }
 0x6ef   : > { %3553 = vmatprep.mubr.msk.f32.mxu0 %vm4109_vm0, %v4110_v4 }
 0x6f2   : > { %3554 = vmatmul.mubr.msk.f32.gmra.mrb[50].mxu0 %vm790_vm3, %v1621_v52 }
 0x6f3   : > { %3583 = vmatprep.mubr.msk.f32.mxu0 %vm4109_vm0, %v4110_v4 }
 0x74c   : > { %v1588_v29 = vpop.f32.mrb[28].mxu1 }
 0x74d   : > { %v3518_v58 = vpop.f32.mrb[29].mxu1 }
 0x750   : > { %v1593_v17 = vpop.f32.mrb[30].mxu1 }
 0x751   : > { %v3521_v30 = vpop.f32.mrb[31].mxu1 }
 0x754   : > { %v1598_v53 = vpop.f32.mrb[32].mxu1 }
 0x755   : > { %v3524_v20 = vpop.f32.mrb[33].mxu1 }
 0x758   : > { %v1603_v32 = vpop.f32.mrb[34].mxu1 }
 0x759   : > { %v3527_v24 = vpop.f32.mrb[35].mxu1 }
 0x75c   : > { %v1608_v34 = vpop.f32.mrb[36].mxu1 }
 0x75d   : > { %v3530_v61 = vpop.f32.mrb[37].mxu1 }
 0x7a1   : > { %v1483_v35 = vpop.f32.mrb[32].mxu0 }
 0x7a2   : > { %v4685_v21 = vadd.f32 %v1588_v29, %v1483_v35  ;;  %v3501_v13 = vpop.f32.mrb[33].mxu0 }
 0x7a5   : > { %v1488_v39 = vpop.f32.mrb[34].mxu0 }
 0x7a6   : > { %v4687_v40 = vadd.f32 %v1593_v17, %v1488_v39  ;;  %v3504_v26 = vpop.f32.mrb[35].mxu0 }
 0x7a9   : > { %v1493_v46 = vpop.f32.mrb[36].mxu0 }
 0x7aa   : > { %v4689_v23 = vadd.f32 %v1598_v53, %v1493_v46  ;;  %v3507_v48 = vpop.f32.mrb[37].mxu0 }
 0x7ad   : > { %v1498_v49 = vpop.f32.mrb[38].mxu0 }
 0x7ae   : > { %v4691_v28 = vadd.f32 %v1603_v32, %v1498_v49  ;;  %v3510_v51 = vpop.f32.mrb[39].mxu0 }
 0x7b1   : > { %v1503_v9 = vpop.f32.mrb[40].mxu0 }
 0x7b2   : > { %v4693_v31 = vadd.f32 %v1608_v34, %v1503_v9  ;;  %v3513_v56 = vpop.f32.mrb[41].mxu0 }
 0x7b5   : > { %v1718_v57 = vpop.f32.mrb[42].mxu0 }
 0x7b6   : > { %v1742_v63 = vmul.f32 0.35355338, %v1718_v57  ;;  %v3543_v36 = vpop.f32.mrb[43].mxu0 }
 0x7b8   : > { %v1747_v1 = vadd.f32 %v1742_v63, %v4463_v41 }
 0x7b9   : > { %v1723_v37 = vpop.f32.mrb[44].mxu0 }
 0x7ba   : > { %v1743_v6 = vmul.f32 0.35355338, %v1723_v37  ;;  %v3546_v8 = vpop.f32.mrb[45].mxu0  ;;  %v1752_v14 = vsel %vm911_vm5, %v1747_v1, -inf }
 0x7bb   : > { %1753 = vmax.xlane.f32.xlu1 %v1752_v14 }
 0x7bc   : > { %v1748_v42 = vadd.f32 %v1743_v6, %v4471_v47 }
 0x7bd   : > { %v1728_v19 = vpop.f32.mrb[46].mxu0 }
 0x7be   : > { %v1744_v43 = vmul.f32 0.35355338, %v1728_v19  ;;  %v3549_v22 = vpop.f32.mrb[47].mxu0  ;;  %v1755_v25 = vsel %vm911_vm5, %v1748_v42, -inf }
 0x7bf   : > { %1756 = vmax.xlane.f32.xlu0 %v1755_v25 }
 0x7c0   : > { %v1749_v45 = vadd.f32 %v1744_v43, %v4481_v55 }
 0x7c1   : > { %v1733_v27 = vpop.f32.mrb[48].mxu0 }
 0x7c2   : > { %v1745_v52 = vmul.f32 0.35355338, %v1733_v27  ;;  %v3552_v29 = vpop.f32.mrb[49].mxu0  ;;  %v1758_v41 = vsel %vm911_vm5, %v1749_v45, -inf }
 0x7c3   : > { %1759 = vmax.xlane.f32.xlu0 %v1758_v41 }
 0x7c4   : > { %v1750_v58 = vadd.f32 %v1745_v52, %v4489_v0 }
 0x7c5   : > { %v1738_v17 = vpop.f32.mrb[50].mxu0 }
 0x7c6   : > { %v1746_v30 = vmul.f32 0.35355338, %v1738_v17  ;;  %v3555_v53 = vpop.f32.mrb[51].mxu0  ;;  %v1761_v47 = vsel %vm911_vm5, %v1750_v58, -inf }
 0x7c7   : > { %1762 = vmax.xlane.f32.xlu0 %v1761_v47 }
 0x7c8   : > { %v1751_v20 = vadd.f32 %v1746_v30, %v4496_v16 }
 0x7ca   : > { %v1764_v32 = vsel %vm911_vm5, %v1751_v20, -inf }
 0x7cb   : > { %1765 = vmax.xlane.f32.xlu1 %v1764_v32 }
 0x848   : > { %v1754_v55 = vpop.xlane.xlu1 %1753 }
 0x849   : > { %v1767_v24 = vsub.f32 %v1747_v1, %v1754_v55 }
 0x84b   : > { %v1772_v34 = vmul.f32 1.442695, %v1767_v24 }
 0x84c   : > { %v1757_v61 = vpop.xlane.xlu0 %1756 }
 0x84d   : > { %3978 = vpow2.f32 %v1772_v34  ;;  %v1768_v35 = vsub.f32 %v1748_v42, %v1757_v61 }
 0x84f   : > { %v1774_v13 = vmul.f32 1.442695, %v1768_v35 }
 0x850   : > { %v1760_v46 = vpop.xlane.xlu0 %1759 }
 0x851   : > { %3980 = vpow2.f32 %v1774_v13  ;;  %v1769_v48 = vsub.f32 %v1749_v45, %v1760_v46 }
 0x853   : > { %v1776_v56 = vmul.f32 1.442695, %v1769_v48 }
 0x854   : > { %v1763_v49 = vpop.xlane.xlu0 %1762 }
 0x855   : > { %v1770_v9 = vsub.f32 %v1750_v58, %v1763_v49  ;;  %3982 = vpow2.f32 %v1776_v56 }
 0x857   : > { %v3979_v0 = vpop.eup %3978  ;;  %v1778_v63 = vmul.f32 1.442695, %v1770_v9 }
 0x858   : > { %v1782_v39 = vsel %vm911_vm5, %v3979_v0, 0.0  ;;  %v1766_v51 = vpop.xlane.xlu1 %1765 }
 0x859   : > { %1783 = vadd.xlane.f32.xlu0 %v1782_v39  ;;  %v1771_v57 = vsub.f32 %v1751_v20, %v1766_v51  ;;  %3984 = vpow2.f32 %v1778_v63  ;;  %v773_v63 = vld [vmem:[%s5163_s6 + $0x10] sm:$0xff] }
 0x85a   : > { %3582 = vmatpush3.msra.mxu0 %v773_v63 }
 0x85b   : > { %v4706_v26 = vpop.eup %3980  ;;  %v1780_v36 = vmul.f32 1.442695, %v1771_v57  ;;  %3737 = vmatprep.subr.bf16.mxu0 %v4108_v2 }
 0x85c   : > { %v1785_v16 = vsel %vm911_vm5, %v4706_v26, 0.0 }
 0x85d   : > { %1786 = vadd.xlane.f32.xlu1 %v1785_v16  ;;  %3986 = vpow2.f32 %v1780_v36 }
 0x85f   : > { %v3983_v1 = vpop.eup %3982 }
 0x860   : > { %v1788_v6 = vsel %vm911_vm5, %v3983_v1, 0.0 }
 0x863   : > { %v4712_v37 = vpop.eup %3984 }
 0x864   : > { %v1791_v14 = vsel %vm911_vm5, %v4712_v37, 0.0 }
 0x867   : > { %v4715_v8 = vpop.eup %3986 }
 0x868   : > { %v1794_v42 = vsel %vm911_vm5, %v4715_v8, 0.0 }
 0x86e   : > { %3899 = vrot.lane.b32.xlu1 %v4380_v62, %s4118_s20 }
 0x86f   : > { %3904 = vrot.lane.b32.xlu0 %v4389_v7, %s4118_s20 }
 0x88e   : > { %1789 = vadd.xlane.f32.xlu0 %v1788_v6 }
 0x892   : > { %1792 = vadd.xlane.f32.xlu0 %v1791_v14  ;;  %1795 = vadd.xlane.f32.xlu1 %v1794_v42 }
 0x8a3   : > { %2041 = vrot.lane.b32.xlu1 %v4383_v3, %s4119_s17 }
 0x8a8   : > { %1815 = vrot.lane.b32.xlu0 %v4393_v10, %s4118_s20 }
 0x8ac   : > { %3909 = vrot.lane.b32.xlu0 %v4380_v62, %s4120_s18 }
 0x8b0   : > { %3914 = vrot.lane.b32.xlu0 %v4389_v7, %s4120_s18 }
 0x8b4   : > { %2055 = vrot.lane.b32.xlu0 %v4393_v10, %s4120_s18  ;;  %s421_s18 = sand.u32 1, %s4098_s22  }
 0x8b5   : > { %s3077_s26 = sshll.u32 %s421_s18, 3  ;;  %s2989_s16 = scalar_lea.sflag [#allocation3], %s421_s18 }
 0x8b6   : > { %s423_s28 = scalar_lea.vmem [#allocation2], %s3077_s26 }
 0x8b8   : > { %2037 = vrot.lane.b32.xlu0 %v4374_v59, %s4119_s17 }
 0x8bc   : > { %2039 = vrot.lane.b32.xlu0 %v4376_v60, %s4119_s17 }
 0x8c0   : > { %2043 = vrot.lane.b32.xlu0 %v4385_v5, %s4119_s17 }
 0x8c4   : > { %2045 = vrot.lane.b32.xlu0 %v4393_v10, %s4119_s17  ;;  %s4048_s17 = sshll.u32 %s4122_s25, 4  ;;  %s4049_s17 = int_to_ptr.vmem [resolvable:$false] %s4048_s17 }
 0x8c5   : > { %s4050_s26 = scalar_lea.vmem %s4049_s17, 256 }
 0x8e6   : > { %v1784_v19 = vpop.xlane.xlu0 %1783 }
 0x8e7   : > { %3988 = vrcp.f32 %v1784_v19 }
 0x8ea   : > { %v1787_v43 = vpop.xlane.xlu1 %1786  ;;  %v3905_v3 = vpop.permute.xlu0 %3904 }
 0x8eb   : > { %v3907_v27 = vunpack.i.h.bf16 %v3905_v3  ;;  %v3906_v52 = vunpack.i.l.bf16 %v3905_v3  ;;  %3990 = vrcp.f32 %v1787_v43 }
 0x8ed   : > { %v3727_v41 = vpack.c.bf16 %v3907_v27, %v3906_v52  ;;  %v4038_v27 = vld [vmem:[%s5159_s2] sm:$0xff] }
 0x8ee   : > { %v3900_v22 = vpop.permute.xlu1 %3899 }
 0x8ef   : > { %v3902_v25 = vunpack.i.h.bf16 %v3900_v22  ;;  %v3901_v45 = vunpack.i.l.bf16 %v3900_v22 }
 0x8f1   : > { %v3724_v29 = vpack.c.bf16 %v3902_v25, %v3901_v45  ;;  %v3989_v5 = vpop.eup %3988 }
 0x8f2   : > { %v1802_v58 = vmul.f32 %v3989_v5, %v3979_v0  ;;  %v4039_v5 = vld [vmem:[%s5159_s2 + $0x8] sm:$0xff] }
 0x8f3   : > { %3725 = vmatpush3.bf16.msra.mxu1 %v3724_v29 }
 0x8f4   : > { %3726 = vmatprep.subr.bf16.mxu1 %v4108_v2 }
 0x8f5   : > { %v3991_v53 = vpop.eup %3990 }
 0x8f6   : > { %v1803_v20 = vmul.f32 %v3991_v53, %v4706_v26 }
 0x8f7   : > { %3728 = vmatpush3.bf16.msra.mxu1 %v3727_v41 }
 0x8f8   : > { %3564 = vmatprep.subr.mxu1 %v4110_v4 }
 0x91b   : > { %v1790_v59 = vpop.xlane.xlu0 %1789 }
 0x91c   : > { %3992 = vrcp.f32 %v1790_v59 }
 0x91f   : > { %v1793_v60 = vpop.xlane.xlu0 %1792  ;;  %v1796_v17 = vpop.xlane.xlu1 %1795 }
 0x920   : > { %3994 = vrcp.f32 %v1793_v60 }
 0x921   : > { %3996 = vrcp.f32 %v1796_v17 }
 0x923   : > { %v1816_v30 = vpop.permute.xlu0 %1815  ;;  %v2042_v9 = vpop.permute.xlu1 %2041 }
 0x924   : > { %3565 = vmatpush3.msra.mxu1 %v1816_v30 }
 0x925   : > { %3567 = vmatmul.mubr.msk.f32.vlgmr.msra.gmra.mrb[38].mxu1 %vm911_vm5, %v1802_v58  ;;  %3729 = vmatprep.subr.bf16.mxu1 %v4108_v2 }
 0x926   : > { %3569 = vmatprep.mubr.msk.f32.mxu1 %vm4109_vm0, %v4110_v4  ;;  %v3993_v32 = vpop.eup %3992 }
 0x927   : > { %v3910_v47 = vpop.permute.xlu0 %3909  ;;  %v1804_v35 = vmul.f32 %v3993_v32, %v3983_v1 }
 0x928   : > { %v3912_v55 = vunpack.i.h.bf16 %v3910_v47  ;;  %v3911_v24 = vunpack.i.l.bf16 %v3910_v47 }
 0x929   : > { %3570 = vmatmul.mubr.msk.f32.gmra.mrb[40].mxu1 %vm911_vm5, %v1803_v20  ;;  %v4040_v20 = vld [vmem:[%s5159_s2 + $0x10] sm:$0xff] }
 0x92a   : > { %v3730_v34 = vpack.c.bf16 %v3912_v55, %v3911_v24  ;;  %3572 = vmatprep.mubr.msk.f32.mxu1 %vm4109_vm0, %v4110_v4  ;;  %v3995_v13 = vpop.eup %3994 }
 0x92b   : > { %v3915_v61 = vpop.permute.xlu0 %3914  ;;  %v1805_v26 = vmul.f32 %v3995_v13, %v4712_v37  ;;  %v3997_v16 = vpop.eup %3996 }
 0x92c   : > { %3732 = vmatpush3.bf16.xpose.msk.msra.mxu1 %vm4405_vm4, %v3730_v34  ;;  %v3917_v0 = vunpack.i.h.bf16 %v3915_v61  ;;  %v3916_v39 = vunpack.i.l.bf16 %v3915_v61  ;;  %v1806_v48 = vmul.f32 %v3997_v16, %v4715_v8 }
 0x92d   : > { %3573 = vmatmul.mubr.msk.f32.gmra.mrb[42].mxu1 %vm911_vm5, %v1804_v35  ;;  %3733 = vmatprep.subr.bf16.mxu1 %v4108_v2  ;;  %v4041_v35 = vld [vmem:[%s5159_s2 + $0x18] sm:$0xff] }
 0x92e   : > { %3575 = vmatprep.mubr.msk.f32.mxu1 %vm4109_vm0, %v4110_v4  ;;  %v3734_v46 = vpack.c.bf16 %v3917_v0, %v3916_v39 }
 0x92f   : > { %v2056_v49 = vpop.permute.xlu0 %2055 }
 0x931   : > { %3576 = vmatmul.mubr.msk.f32.gmra.mrb[44].mxu1 %vm911_vm5, %v1805_v26 }
 0x932   : > { %3578 = vmatprep.mubr.msk.f32.mxu1 %vm4109_vm0, %v4110_v4 }
 0x933   : > { %v2038_v51 = vpop.permute.xlu0 %2037 }
 0x934   : > { %3736 = vmatpush3.bf16.xpose.msk.msra.mxu1 %vm4405_vm4, %v3734_v46  ;;  %v4042_v46 = vld [vmem:[%s5159_s2 + $0x20] sm:$0xff] }
 0x935   : > { %3579 = vmatmul.mubr.msk.f32.gmra.mrb[46].mxu1 %vm911_vm5, %v1806_v48  ;;  %3606 = vmatprep.subr.mxu1 %v4110_v4 }
 0x936   : > { %3608 = vmatprep.mubr.msk.f32.mxu1 %vm4109_vm0, %v4110_v4 }
 0x937   : > { %v2040_v18 = vpop.permute.xlu0 %2039 }
 0x93b   : > { %v2044_v56 = vpop.permute.xlu0 %2043 }
 0x93c   : > { %3607 = vmatpush3.xpose.msk.msra.mxu1 %vm790_vm3, %v2056_v49 }
 0x93d   : > { %3648 = vmatprep.subr.mxu1 %v4110_v4 }
 0x93f   : > { %3609 = vmatmul.mubr.msk.f32.vlgmr.msra.gmra.mrb[48].mxu1 %vm790_vm3, %v2038_v51  ;;  %v2046_v57 = vpop.permute.xlu0 %2045 }
 0x940   : > { %3611 = vmatprep.mubr.msk.f32.mxu1 %vm4109_vm0, %v4110_v4 }
 0x943   : > { %3612 = vmatmul.mubr.msk.f32.gmra.mrb[50].mxu1 %vm790_vm3, %v2040_v18 }
 0x944   : > { %3614 = vmatprep.mubr.msk.f32.mxu1 %vm4109_vm0, %v4110_v4 }
 0x947   : > { %3615 = vmatmul.mubr.msk.f32.gmra.mrb[52].mxu1 %vm790_vm3, %v2042_v9 }
 0x948   : > { %3617 = vmatprep.mubr.msk.f32.mxu1 %vm4109_vm0, %v4110_v4 }
 0x94b   : > { %3618 = vmatmul.mubr.msk.f32.gmra.mrb[54].mxu1 %vm790_vm3, %v2044_v56 }
 0x94c   : > { %3620 = vmatprep.mubr.msk.f32.mxu1 %vm4109_vm0, %v4110_v4 }
 0x94f   : > { %3621 = vmatmul.mubr.msk.f32.gmra.mrb[56].mxu1 %vm790_vm3, %v2046_v57 }
 0x950   : > { %3650 = vmatprep.mubr.msk.f32.mxu1 %vm4109_vm0, %v4110_v4 }
 0x9f8   : > { %v1903_v36 = vpop.f32.mrb[38].mxu1 }
 0x9f9   : > { %v3568_v1 = vpop.f32.mrb[39].mxu1  ;;  %3584 = vmatmul.mubr.msk.f32.vlgmr.msra.gmra.mrb[52].mxu0 %vm790_vm3, %v1903_v36 }
 0x9fa   : > { %3586 = vmatprep.mubr.msk.f32.mxu0 %vm4109_vm0, %v4110_v4 }
 0x9fc   : > { %v1908_v37 = vpop.f32.mrb[40].mxu1 }
 0x9fd   : > { %v3571_v6 = vpop.f32.mrb[41].mxu1  ;;  %3587 = vmatmul.mubr.msk.f32.gmra.mrb[54].mxu0 %vm790_vm3, %v1908_v37 }
 0x9fe   : > { %3589 = vmatprep.mubr.msk.f32.mxu0 %vm4109_vm0, %v4110_v4 }
 0xa00   : > { %v1913_v8 = vpop.f32.mrb[42].mxu1 }
 0xa01   : > { %v3574_v14 = vpop.f32.mrb[43].mxu1  ;;  %3590 = vmatmul.mubr.msk.f32.gmra.mrb[56].mxu0 %vm790_vm3, %v1913_v8 }
 0xa02   : > { %3592 = vmatprep.mubr.msk.f32.mxu0 %vm4109_vm0, %v4110_v4 }
 0xa04   : > { %v1918_v42 = vpop.f32.mrb[44].mxu1 }
 0xa05   : > { %v3577_v19 = vpop.f32.mrb[45].mxu1  ;;  %3593 = vmatmul.mubr.msk.f32.gmra.mrb[58].mxu0 %vm790_vm3, %v1918_v42 }
 0xa06   : > { %3595 = vmatprep.mubr.msk.f32.mxu0 %vm4109_vm0, %v4110_v4 }
 0xa08   : > { %v1923_v43 = vpop.f32.mrb[46].mxu1 }
 0xa09   : > { %v3580_v3 = vpop.f32.mrb[47].mxu1  ;;  %3596 = vmatmul.mubr.msk.f32.gmra.mrb[60].mxu0 %vm790_vm3, %v1923_v43 }
 0xa0a   : > { %3633 = vmatprep.mubr.msk.f32.mxu0 %vm4109_vm0, %v4110_v4 }
 0xa12   : > { %v2143_v22 = vpop.f32.mrb[48].mxu1 }
 0xa13   : > { %v2167_v25 = vmul.f32 0.35355338, %v2143_v22  ;;  %v3610_v45 = vpop.f32.mrb[49].mxu1 }
 0xa15   : > { %v2172_v52 = vadd.f32 %v4038_v27, %v2167_v25 }
 0xa16   : > { %v2148_v29 = vpop.f32.mrb[50].mxu1 }
 0xa17   : > { %v2168_v41 = vmul.f32 0.35355338, %v2148_v29  ;;  %v3613_v59 = vpop.f32.mrb[51].mxu1  ;;  %v2177_v60 = vsel %vm911_vm5, %v2172_v52, -inf }
 0xa18   : > { %2178 = vmax.xlane.f32.xlu0 %v2177_v60 }
 0xa19   : > { %v2173_v58 = vadd.f32 %v4039_v5, %v2168_v41 }
 0xa1a   : > { %v2153_v17 = vpop.f32.mrb[52].mxu1 }
 0xa1b   : > { %v2169_v30 = vmul.f32 0.35355338, %v2153_v17  ;;  %v3616_v53 = vpop.f32.mrb[53].mxu1  ;;  %v2180_v47 = vsel %vm911_vm5, %v2173_v58, -inf }
 0xa1c   : > { %2181 = vmax.xlane.f32.xlu1 %v2180_v47 }
 0xa1d   : > { %v2174_v32 = vadd.f32 %v4040_v20, %v2169_v30 }
 0xa1e   : > { %v2158_v55 = vpop.f32.mrb[54].mxu1 }
 0xa1f   : > { %v2170_v24 = vmul.f32 0.35355338, %v2158_v55  ;;  %v3619_v34 = vpop.f32.mrb[55].mxu1  ;;  %v2183_v61 = vsel %vm911_vm5, %v2174_v32, -inf }
 0xa20   : > { %2184 = vmax.xlane.f32.xlu0 %v2183_v61 }
 0xa21   : > { %v2175_v13 = vadd.f32 %v4041_v35, %v2170_v24 }
 0xa22   : > { %v2163_v0 = vpop.f32.mrb[56].mxu1 }
 0xa23   : > { %v2171_v39 = vmul.f32 0.35355338, %v2163_v0  ;;  %v3622_v26 = vpop.f32.mrb[57].mxu1  ;;  %v2186_v16 = vsel %vm911_vm5, %v2175_v13, -inf }
 0xa24   : > { %2187 = vmax.xlane.f32.xlu0 %v2186_v16 }
 0xa25   : > { %v2176_v48 = vadd.f32 %v4042_v46, %v2171_v39 }
 0xa27   : > { %v2189_v49 = vsel %vm911_vm5, %v2176_v48, -inf }
 0xa28   : > { %2190 = vmax.xlane.f32.xlu0 %v2189_v49 }
 0xa3e   : > { %3919 = vrot.lane.b32.xlu0 %v4380_v62, %s4121_s29 }
 0xaa5   : > { %v2179_v51 = vpop.xlane.xlu0 %2178 }
 0xaa6   : > { %v2192_v18 = vsub.f32 %v2172_v52, %v2179_v51 }
 0xaa8   : > { %v2197_v9 = vmul.f32 1.442695, %v2192_v18 }
 0xaa9   : > { %v2182_v56 = vpop.xlane.xlu1 %2181 }
 0xaaa   : > { %3998 = vpow2.f32 %v2197_v9  ;;  %v2193_v57 = vsub.f32 %v2173_v58, %v2182_v56 }
 0xaac   : > { %v2199_v63 = vmul.f32 1.442695, %v2193_v57 }
 0xaad   : > { %v2185_v36 = vpop.xlane.xlu0 %2184 }
 0xaae   : > { %4000 = vpow2.f32 %v2199_v63  ;;  %v2194_v1 = vsub.f32 %v2174_v32, %v2185_v36 }
 0xab0   : > { %v2201_v37 = vmul.f32 1.442695, %v2194_v1 }
 0xab1   : > { %v2188_v6 = vpop.xlane.xlu0 %2187 }
 0xab2   : > { %4002 = vpow2.f32 %v2201_v37  ;;  %v2195_v8 = vsub.f32 %v2175_v13, %v2188_v6 }
 0xab4   : > { %v3999_v14 = vpop.eup %3998  ;;  %v2203_v42 = vmul.f32 1.442695, %v2195_v8 }
 0xab5   : > { %v2191_v19 = vpop.xlane.xlu0 %2190  ;;  %v2207_v43 = vsel %vm911_vm5, %v3999_v14, 0.0 }
 0xab6   : > { %4004 = vpow2.f32 %v2203_v42  ;;  %v2196_v62 = vsub.f32 %v2176_v48, %v2191_v19  ;;  %2208 = vadd.xlane.f32.xlu0 %v2207_v43 }
 0xab8   : > { %v4001_v3 = vpop.eup %4000  ;;  %v2205_v22 = vmul.f32 1.442695, %v2196_v62 }
 0xab9   : > { %v3920_v25 = vpop.permute.xlu0 %3919  ;;  %v2210_v45 = vsel %vm911_vm5, %v4001_v3, 0.0 }
 0xaba   : > { %4006 = vpow2.f32 %v2205_v22  ;;  %v3922_v27 = vunpack.i.h.bf16 %v3920_v25  ;;  %v3921_v52 = vunpack.i.l.bf16 %v3920_v25  ;;  %2211 = vadd.xlane.f32.xlu1 %v2210_v45 }
 0xabc   : > { %v4003_v29 = vpop.eup %4002  ;;  %v3738_v41 = vpack.c.bf16 %v3922_v27, %v3921_v52  ;;  %v2464_v52 = vsub.s32 3, %v4268_v11 }
 0xabd   : > { %v2213_v59 = vsel %vm911_vm5, %v4003_v29, 0.0 }
 0xabe   : > { %2214 = vadd.xlane.f32.xlu0 %v2213_v59  ;;  %3739 = vmatpush3.bf16.msra.mxu0 %v3738_v41 }
 0xabf   : > { %3740 = vmatprep.subr.bf16.mxu0 %v4108_v2 }
 0xac0   : > { %v4005_v60 = vpop.eup %4004 }
 0xac1   : > { %v2216_v5 = vsel %vm911_vm5, %v4005_v60, 0.0 }
 0xac2   : > { %2217 = vadd.xlane.f32.xlu1 %v2216_v5 }
 0xac4   : > { %v4007_v58 = vpop.eup %4006 }
 0xac5   : > { %v2219_v17 = vsel %vm911_vm5, %v4007_v58, 0.0 }
 0xac6   : > { %2220 = vadd.xlane.f32.xlu1 %v2219_v17 }
 0xacc   : > { %v2008_v30 = vpop.f32.mrb[52].mxu0 }
 0xacd   : > { %v4822_v53 = vadd.f32 %v2008_v30, %v4685_v21  ;;  %v3585_v47 = vpop.f32.mrb[53].mxu0 }
 0xad0   : > { %v2013_v20 = vpop.f32.mrb[54].mxu0 }
 0xad1   : > { %v4825_v32 = vadd.f32 %v2013_v20, %v4687_v40  ;;  %v3588_v55 = vpop.f32.mrb[55].mxu0 }
 0xad4   : > { %2240 = vrot.lane.b32.xlu0 %v4393_v10, %s4121_s29  ;;  %v2018_v24 = vpop.f32.mrb[56].mxu0  ;;  %v774_v10 = vld [vmem:[%s5163_s6 + $0x18] sm:$0xff] }
 0xad5   : > { %v4830_v34 = vadd.f32 %v2018_v24, %v4689_v23  ;;  %v3591_v61 = vpop.f32.mrb[57].mxu0  ;;  %3649 = vmatpush3.msra.mxu1 %v774_v10 }
 0xad7   : > { %3924 = vrot.lane.b32.xlu1 %v4389_v7, %s4121_s29  ;;  %s3002_s29 = sshll.u32 %s423_s28, 4  ;;  %s5116_s29 = int_to_ptr.vmem [resolvable:$true] %s3002_s29 }
 0xad8   : > { %v2023_v35 = vpop.f32.mrb[58].mxu0  ;;  %s4044_s20 = scalar_lea.vmem %s5116_s29, 128  ;;  %p4051_p0 = scmp.lt.s32.totalorder %s5116_s29, %s4049_s17 }
 0xad9   : > { %v4835_v21 = vadd.f32 %v2023_v35, %v4691_v28  ;;  %v3594_v13 = vpop.f32.mrb[59].mxu0  ;;  %p4045_p11 = scmp.ne.s32.totalorder %s5116_s29, %s4044_s20  ;;  %p4052_p1 = scmp.lt.s32.totalorder %s4050_s26, %s4044_s20 }
 0xadb   : > { %p4046_p12 = pnand %p4045_p11, %p4226_p5  ;;  %p4053_p2 = por %p4052_p1, %p4051_p0 }
 0xadc   : > { %v2028_v0 = vpop.f32.mrb[60].mxu0 }
 0xadd   : > { %v4838_v40 = vadd.f32 %v2028_v0, %v4693_v31  ;;  %v3597_v39 = vpop.f32.mrb[61].mxu0  ;;  %p4047_p13 = pneg %p4046_p12 }
 0xadf   : > { %p4054_p3 = pnand %p4053_p2, %p4047_p13 }
 0xb43   : > { %v2209_v26 = vpop.xlane.xlu0 %2208 }
 0xb44   : > { %4008 = vrcp.f32 %v2209_v26 }
 0xb47   : > { %v2212_v23 = vpop.xlane.xlu1 %2211 }
 0xb48   : > { %4010 = vrcp.f32 %v2212_v23 }
 0xb4b   : > { %v2215_v46 = vpop.xlane.xlu0 %2214 }
 0xb4c   : > { %4012 = vrcp.f32 %v2215_v46 }
 0xb4e   : > { %v4009_v31 = vpop.eup %4008 }
 0xb4f   : > { %v2218_v16 = vpop.xlane.xlu1 %2217  ;;  %v2227_v18 = vmul.f32 %v4009_v31, %v3999_v14  ;;  %v2241_v9 = vpop.permute.xlu0 %2240 }
 0xb50   : > { %4014 = vrcp.f32 %v2218_v16 }
 0xb52   : > { %v4011_v56 = vpop.eup %4010 }
 0xb53   : > { %v2221_v7 = vpop.xlane.xlu1 %2220  ;;  %v2228_v57 = vmul.f32 %v4011_v56, %v4001_v3 }
 0xb54   : > { %4016 = vrcp.f32 %v2221_v7 }
 0xb56   : > { %v4013_v63 = vpop.eup %4012 }
 0xb57   : > { %v3925_v28 = vpop.permute.xlu1 %3924  ;;  %v2229_v36 = vmul.f32 %v4013_v63, %v4003_v29  ;;  %v4875_v29 = vld [vmem:[%s5168_s11] sm:$0xff] }
 0xb58   : > { %v3927_v48 = vunpack.i.h.bf16 %v3925_v28  ;;  %v3926_v49 = vunpack.i.l.bf16 %v3925_v28  ;;  %v2465_v41 = vrot.slane %v4875_v29, %v2464_v52  ;;  %v2562_v52 = vld [vmem:[%s5164_s7 + $0x18] sm:$0xff] }
 0xb5a   : > { %v3741_v51 = vpack.c.bf16 %v3927_v48, %v3926_v49  ;;  %v4015_v1 = vpop.eup %4014 }
 0xb5b   : > { %v2230_v37 = vmul.f32 %v4015_v1, %v4005_v60 }
 0xb5c   : > { %3742 = vmatpush3.bf16.msra.mxu0 %v3741_v51 }
 0xb5d   : > { %3631 = vmatprep.subr.mxu0 %v4110_v4 }
 0xb5e   : > { %v4017_v6 = vpop.eup %4016 }
 0xb5f   : > { %v2231_v8 = vmul.f32 %v4017_v6, %v4007_v58 }
 0xb60   : > { %3632 = vmatpush3.msra.mxu0 %v2241_v9 }
 0xb61   : > { %3634 = vmatmul.mubr.msk.f32.vlgmr.msra.gmra.mrb[62].mxu0 %vm911_vm5, %v2227_v18 }
 0xb62   : > { %3636 = vmatprep.mubr.msk.f32.mxu0 %vm4109_vm0, %v4110_v4 }
 0xb65   : > { %3637 = vmatmul.mubr.msk.f32.gmra.mrb[64].mxu0 %vm911_vm5, %v2228_v57 }
 0xb66   : > { %3639 = vmatprep.mubr.msk.f32.mxu0 %vm4109_vm0, %v4110_v4 }
 0xb69   : > { %3640 = vmatmul.mubr.msk.f32.gmra.mrb[66].mxu0 %vm911_vm5, %v2229_v36 }
 0xb6a   : > { %3642 = vmatprep.mubr.msk.f32.mxu0 %vm4109_vm0, %v4110_v4 }
 0xb6d   : > { %3643 = vmatmul.mubr.msk.f32.gmra.mrb[68].mxu0 %vm911_vm5, %v2230_v37 }
 0xb6e   : > { %3645 = vmatprep.mubr.msk.f32.mxu0 %vm4109_vm0, %v4110_v4 }
 0xb71   : > { %3646 = vmatmul.mubr.msk.f32.gmra.mrb[70].mxu0 %vm911_vm5, %v2231_v8 }
 0xb72   : > { %2658 = vmatprep.mubr.f32.mxu0 %v4110_v4 }
 0xc34   : > { %v2328_v14 = vpop.f32.mrb[62].mxu0 }
 0xc35   : > { %v3635_v42 = vpop.f32.mrb[63].mxu0  ;;  %3651 = vmatmul.mubr.msk.f32.vlgmr.msra.gmra.mrb[58].mxu1 %vm790_vm3, %v2328_v14 }
 0xc36   : > { %3653 = vmatprep.mubr.msk.f32.mxu1 %vm4109_vm0, %v4110_v4 }
 0xc38   : > { %v2333_v19 = vpop.f32.mrb[64].mxu0 }
 0xc39   : > { %v3638_v43 = vpop.f32.mrb[65].mxu0  ;;  %3654 = vmatmul.mubr.msk.f32.gmra.mrb[60].mxu1 %vm790_vm3, %v2333_v19 }
 0xc3a   : > { %3656 = vmatprep.mubr.msk.f32.mxu1 %vm4109_vm0, %v4110_v4 }
 0xc3c   : > { %v2338_v62 = vpop.f32.mrb[66].mxu0 }
 0xc3d   : > { %v3641_v3 = vpop.f32.mrb[67].mxu0  ;;  %3657 = vmatmul.mubr.msk.f32.gmra.mrb[62].mxu1 %vm790_vm3, %v2338_v62 }
 0xc3e   : > { %3659 = vmatprep.mubr.msk.f32.mxu1 %vm4109_vm0, %v4110_v4 }
 0xc40   : > { %v2343_v22 = vpop.f32.mrb[68].mxu0 }
 0xc41   : > { %v3644_v25 = vpop.f32.mrb[69].mxu0  ;;  %3660 = vmatmul.mubr.msk.f32.gmra.mrb[64].mxu1 %vm790_vm3, %v2343_v22 }
 0xc42   : > { %3662 = vmatprep.mubr.msk.f32.mxu1 %vm4109_vm0, %v4110_v4 }
 0xc44   : > { %v2348_v45 = vpop.f32.mrb[70].mxu0 }
 0xc45   : > { %v3647_v27 = vpop.f32.mrb[71].mxu0  ;;  %3663 = vmatmul.mubr.msk.f32.gmra.mrb[66].mxu1 %vm790_vm3, %v2348_v45 }
 0xc46   : > { %v2560_v27 = vld [vmem:[%s5164_s7 + $0x8] sm:$0xff] }
 0xd08   : > { %v2433_v59 = vpop.f32.mrb[58].mxu1 }
 0xd09   : > { %v2457_v60 = vadd.f32 %v2433_v59, %v4822_v53  ;;  %v3652_v5 = vpop.f32.mrb[59].mxu1  ;;  %v2559_v59 = vld [vmem:[%s5164_s7] sm:$0xff] }
 0xd0b   : > { %v2466_v58 = vadd.f32 %v2465_v41, %v2457_v60  ;;  %v2561_v60 = vld [vmem:[%s5164_s7 + $0x10] sm:$0xff] }
 0xd0c   : > { %v2438_v17 = vpop.f32.mrb[60].mxu1  ;;  %v3745_v5 = vpack.c.bf16 %v2561_v60, %v2559_v59 }
 0xd0d   : > { %v2458_v30 = vadd.f32 %v2438_v17, %v4825_v32  ;;  %v3655_v47 = vpop.f32.mrb[61].mxu1  ;;  %v2471_v20 = vadd.f32 %v2466_v58, %v4334_v33  ;;  %v2564_v58 = vld [vmem:[%s5164_s7 + $0x28] sm:$0xff]  ;;  %v2566_v17 = vld [vmem:[%s5164_s7 + $0x38] sm:$0xff] }
 0xd0e   : > { %v2563_v47 = vld [vmem:[%s5164_s7 + $0x20] sm:$0xff] }
 0xd0f   : > { %v2467_v55 = vadd.f32 %v2465_v41, %v2458_v30  ;;  %v2476_v24 = vsel %vm555_vm2, %v2471_v20, 0.0  ;;  %v3747_v30 = vpack.c.bf16 %v2566_v17, %v2564_v58  ;;  %v2543_v58 = vsub.s32 4, %v4268_v11 }
 0xd10   : > { %2477 = vadd.xlane.f32.xlu1 %v2476_v24  ;;  %v2443_v61 = vpop.f32.mrb[62].mxu1  ;;  %v2715_v24 = vld [vmem:[%s5165_s8 + $0x80] sm:$0xff] }
 0xd11   : > { %v2459_v35 = vadd.f32 %v2443_v61, %v4830_v34  ;;  %v3658_v13 = vpop.f32.mrb[63].mxu1  ;;  %v2472_v0 = vadd.f32 %v2467_v55, %v4342_v38  ;;  %v2716_v61 = vld [vmem:[%s5165_s8 + $0x88] sm:$0xff] }
 0xd12   : > { %v3751_v13 = vpack.c.bf16 %v2716_v61, %v2715_v24 }
 0xd13   : > { %v2468_v39 = vadd.f32 %v2465_v41, %v2459_v35  ;;  %v2479_v53 = vsel %vm555_vm2, %v2472_v0, 0.0  ;;  %v2699_v35 = vld [vmem:[%s5165_s8] sm:$0xff] }
 0xd14   : > { %2480 = vadd.xlane.f32.xlu0 %v2479_v53  ;;  %v2448_v10 = vpop.f32.mrb[64].mxu1  ;;  %v2718_v53 = vld [vmem:[%s5165_s8 + $0x98] sm:$0xff]  ;;  %3752 = vmatprep.subr.bf16.mxu1 %v3751_v13 }
 0xd15   : > { %v2460_v32 = vadd.f32 %v2448_v10, %v4835_v21  ;;  %v3661_v23 = vpop.f32.mrb[65].mxu1  ;;  %v2473_v33 = vadd.f32 %v2468_v39, %v4350_v44  ;;  %v2717_v39 = vld [vmem:[%s5165_s8 + $0x90] sm:$0xff] }
 0xd16   : > { %v2701_v23 = vld [vmem:[%s5165_s8 + $0x10] sm:$0xff] }
 0xd17   : > { %v2469_v26 = vadd.f32 %v2465_v41, %v2460_v32  ;;  %v2482_v16 = vsel %vm555_vm2, %v2473_v33, 0.0  ;;  %v3755_v32 = vpack.c.bf16 %v2718_v53, %v2717_v39 }
 0xd18   : > { %2483 = vadd.xlane.f32.xlu0 %v2482_v16  ;;  %v2453_v7 = vpop.f32.mrb[66].mxu1  ;;  %v2720_v16 = vld [vmem:[%s5165_s8 + $0xa8] sm:$0xff] }
 0xd19   : > { %v2461_v34 = vadd.f32 %v2453_v7, %v4838_v40  ;;  %v3664_v46 = vpop.f32.mrb[67].mxu1  ;;  %v2474_v38 = vadd.f32 %v2469_v26, %v4358_v50  ;;  %v2719_v26 = vld [vmem:[%s5165_s8 + $0xa0] sm:$0xff] }
 0xd1a   : > { %v2703_v46 = vld [vmem:[%s5165_s8 + $0x20] sm:$0xff] }
 0xd1b   : > { %v2470_v28 = vadd.f32 %v2465_v41, %v2461_v34  ;;  %v2485_v48 = vsel %vm555_vm2, %v2474_v38, 0.0  ;;  %v3743_v41 = vpack.c.bf16 %v2562_v52, %v2560_v27  ;;  %v3759_v34 = vpack.c.bf16 %v2720_v16, %v2719_v26 }
 0xd1c   : > { %2486 = vadd.xlane.f32.xlu1 %v2485_v48  ;;  %v2722_v48 = vld [vmem:[%s5165_s8 + $0xb8] sm:$0xff] }
 0xd1d   : > { %v2475_v49 = vadd.f32 %v2470_v28, %v4365_v54  ;;  %3744 = vmatprep.subr.bf16.mxu0 %v3743_v41  ;;  %v2721_v28 = vld [vmem:[%s5165_s8 + $0xb0] sm:$0xff] }
 0xd1e   : > { %3746 = vmatpush1.bf16.msra.mxu0 %v3745_v5 }
 0xd1f   : > { %v2488_v21 = vsel %vm555_vm2, %v2475_v49, 0.0  ;;  %3748 = vmatprep.subr.bf16.mxu0 %v3747_v30  ;;  %v2552_v30 = vsub.s32 5, %v4268_v11 }
 0xd20   : > { %2489 = vadd.xlane.f32.xlu0 %v2488_v21  ;;  %v3763_v21 = vpack.c.bf16 %v2722_v48, %v2721_v28 }
 0xd9d   : > { %v2478_v44 = vpop.xlane.xlu1 %2477 }
 0xd9e   : > { %v2491_v51 = vmul.f32 0.03125, %v2478_v44  ;;  %v2705_v44 = vld [vmem:[%s5165_s8 + $0x30] sm:$0xff] }
 0xda0   : > { %v4893_v31 = vsub.f32 %v2471_v20, %v2491_v51  ;;  %v2565_v20 = vld [vmem:[%s5164_s7 + $0x30] sm:$0xff]  ;;  %v2706_v51 = vld [vmem:[%s5165_s8 + $0x38] sm:$0xff] }
 0xda1   : > { %v2481_v18 = vpop.xlane.xlu0 %2480  ;;  %v3749_v55 = vpack.c.bf16 %v2565_v20, %v2563_v47 }
 0xda2   : > { %v2492_v9 = vmul.f32 0.03125, %v2481_v18  ;;  %v2501_v40 = vmul.f32 %v4893_v31, %v4893_v31  ;;  %v2723_v18 = vld [vmem:[%s5165_s8 + $0xc0] sm:$0xff] }
 0xda3   : > { %3750 = vmatpush1.bf16.msra.mxu0 %v3749_v55  ;;  %v2544_v55 = vrot.slane %v4875_v29, %v2543_v58 }
 0xda4   : > { %v4897_v56 = vsub.f32 %v2472_v0, %v2492_v9  ;;  %v2506_v50 = vsel %vm555_vm2, %v2501_v40, 0.0  ;;  %3783 = vmatprep.subr.bf16.mxu0 %v4108_v2  ;;  %v2700_v0 = vld [vmem:[%s5165_s8 + $0x8] sm:$0xff]  ;;  %v3765_v40 = vpack.c.bf16 %v2706_v51, %v2705_v44 }
 0xda5   : > { %v2484_v57 = vpop.xlane.xlu0 %2483  ;;  %2507 = vadd.xlane.f32.xlu1 %v2506_v50  ;;  %v3753_v10 = vpack.c.bf16 %v2700_v0, %v2699_v35  ;;  %v2724_v9 = vld [vmem:[%s5165_s8 + $0xc8] sm:$0xff]  ;;  %v2553_v35 = vrot.slane %v4875_v29, %v2552_v30 }
 0xda6   : > { %v2493_v63 = vmul.f32 0.03125, %v2484_v57  ;;  %v2502_v54 = vmul.f32 %v4897_v56, %v4897_v56  ;;  %v3767_v50 = vpack.c.bf16 %v2724_v9, %v2723_v18  ;;  %v2707_v57 = vld [vmem:[%s5165_s8 + $0x40] sm:$0xff]  ;;  %v2729_v18 = vld [vmem:[%s5165_s8 + $0xf0] sm:$0xff]  ;;  %v2730_v9 = vld [vmem:[%s5165_s8 + $0xf8] sm:$0xff] }
 0xda7   : > { %3754 = vmatpush3.bf16.msra.mxu1 %v3753_v10 }
 0xda8   : > { %v4902_v36 = vsub.f32 %v2473_v33, %v2493_v63  ;;  %v2509_v1 = vsel %vm555_vm2, %v2502_v54, 0.0  ;;  %v2702_v33 = vld [vmem:[%s5165_s8 + $0x18] sm:$0xff]  ;;  %3756 = vmatprep.subr.bf16.mxu1 %v3755_v32  ;;  %v2708_v63 = vld [vmem:[%s5165_s8 + $0x48] sm:$0xff]  ;;  %v2725_v54 = vld [vmem:[%s5165_s8 + $0xd0] sm:$0xff] }
 0xda9   : > { %v2487_v37 = vpop.xlane.xlu1 %2486  ;;  %2510 = vadd.xlane.f32.xlu0 %v2509_v1  ;;  %v3757_v7 = vpack.c.bf16 %v2702_v33, %v2701_v23  ;;  %v2726_v1 = vld [vmem:[%s5165_s8 + $0xd8] sm:$0xff] }
 0xdaa   : > { %v2494_v6 = vmul.f32 0.03125, %v2487_v37  ;;  %v2503_v8 = vmul.f32 %v4902_v36, %v4902_v36  ;;  %v3769_v37 = vpack.c.bf16 %v2708_v63, %v2707_v57  ;;  %v2714_v57 = vld [vmem:[%s5165_s8 + $0x78] sm:$0xff] }
 0xdab   : > { %3758 = vmatpush3.bf16.msra.mxu1 %v3757_v7 }
 0xdac   : > { %v4907_v14 = vsub.f32 %v2474_v38, %v2494_v6  ;;  %v2512_v42 = vsel %vm555_vm2, %v2503_v8, 0.0  ;;  %v2704_v38 = vld [vmem:[%s5165_s8 + $0x28] sm:$0xff]  ;;  %3760 = vmatprep.subr.bf16.mxu1 %v3759_v34  ;;  %v3771_v6 = vpack.c.bf16 %v2726_v1, %v2725_v54  ;;  %v2709_v8 = vld [vmem:[%s5165_s8 + $0x50] sm:$0xff]  ;;  %v2567_v54 = vld [vmem:[%s5167_s10] sm:$0x3] }
 0xdad   : > { %2513 = vadd.xlane.f32.xlu1 %v2512_v42  ;;  %v2490_v19 = vpop.xlane.xlu0 %2489  ;;  %v2710_v42 = vld [vmem:[%s5165_s8 + $0x58] sm:$0xff]  ;;  %v2572_v1 = vrot.slane %v2567_v54, %v447_v12 }
 0xdae   : > { %v2495_v43 = vmul.f32 0.03125, %v2490_v19  ;;  %v2504_v62 = vmul.f32 %v4907_v14, %v4907_v14  ;;  %v2727_v19 = vld [vmem:[%s5165_s8 + $0xe0] sm:$0xff] }
 0xdb0   : > { %v4912_v3 = vsub.f32 %v2475_v49, %v2495_v43  ;;  %v2515_v22 = vsel %vm555_vm2, %v2504_v62, 0.0  ;;  %v3761_v49 = vpack.c.bf16 %v2704_v38, %v2703_v46  ;;  %v2728_v43 = vld [vmem:[%s5165_s8 + $0xe8] sm:$0xff]  ;;  %v3773_v62 = vpack.c.bf16 %v2710_v42, %v2709_v8 }
 0xdb1   : > { %2516 = vadd.xlane.f32.xlu0 %v2515_v22  ;;  %v3775_v22 = vpack.c.bf16 %v2728_v43, %v2727_v19 }
 0xdb2   : > { %v2505_v25 = vmul.f32 %v4912_v3, %v4912_v3  ;;  %3762 = vmatpush3.bf16.msra.mxu1 %v3761_v49 }
 0xdb3   : > { %3764 = vmatprep.subr.bf16.mxu1 %v3763_v21 }
 0xdb4   : > { %v2518_v45 = vsel %vm555_vm2, %v2505_v25, 0.0 }
 0xdb5   : > { %2519 = vadd.xlane.f32.xlu1 %v2518_v45 }
 0xdb6   : > { %3766 = vmatpush3.bf16.msra.mxu1 %v3765_v40  ;;  %v3779_v40 = vpack.c.bf16 %v2730_v9, %v2729_v18 }
 0xdb7   : > { %3768 = vmatprep.subr.bf16.mxu1 %v3767_v50  ;;  %v2713_v50 = vld [vmem:[%s5165_s8 + $0x70] sm:$0xff] }
 0xdb8   : > { %v3781_v63 = vpack.c.bf16 %v2714_v57, %v2713_v50 }
 0xdba   : > { %3770 = vmatpush3.bf16.msra.mxu1 %v3769_v37  ;;  %v2576_v37 = vrot.slane %v2567_v54, %v624_v15 }
 0xdbb   : > { %3772 = vmatprep.subr.bf16.mxu1 %v3771_v6 }
 0xdbe   : > { %3774 = vmatpush3.bf16.msra.mxu1 %v3773_v62 }
 0xdbf   : > { %3776 = vmatprep.subr.bf16.mxu1 %v3775_v22 }
 0xe32   : > { %v2508_v25 = vpop.xlane.xlu1 %2507 }
 0xe33   : > { %v2521_v45 = vmul.f32 0.03125, %v2508_v25 }
 0xe35   : > { %v2526_v27 = vadd.f32 1e-05, %v2521_v45 }
 0xe36   : > { %v2511_v52 = vpop.xlane.xlu0 %2510 }
 0xe37   : > { %4018 = vrsqrt.f32 %v2526_v27  ;;  %v2522_v41 = vmul.f32 0.03125, %v2511_v52 }
 0xe39   : > { %v2527_v59 = vadd.f32 1e-05, %v2522_v41 }
 0xe3a   : > { %v2514_v60 = vpop.xlane.xlu1 %2513 }
 0xe3b   : > { %4020 = vrsqrt.f32 %v2527_v59  ;;  %v2523_v5 = vmul.f32 0.03125, %v2514_v60 }
 0xe3d   : > { %v2528_v17 = vadd.f32 1e-05, %v2523_v5 }
 0xe3e   : > { %v2517_v47 = vpop.xlane.xlu0 %2516 }
 0xe3f   : > { %4022 = vrsqrt.f32 %v2528_v17  ;;  %v2524_v20 = vmul.f32 0.03125, %v2517_v47 }
 0xe41   : > { %v4019_v24 = vpop.eup %4018  ;;  %v2529_v61 = vadd.f32 1e-05, %v2524_v20 }
 0xe42   : > { %v2536_v13 = vmul.f32 %v4019_v24, %v4893_v31  ;;  %v2520_v0 = vpop.xlane.xlu1 %2519 }
 0xe43   : > { %4024 = vrsqrt.f32 %v2529_v61  ;;  %v2525_v39 = vmul.f32 0.03125, %v2520_v0 }
 0xe44   : > { %v2545_v53 = vmul.f32 %v2544_v55, %v2536_v13 }
 0xe45   : > { %v4021_v10 = vpop.eup %4020  ;;  %v2530_v32 = vadd.f32 1e-05, %v2525_v39 }
 0xe46   : > { %v5026_v23 = vadd.f32 %v2553_v35, %v2545_v53  ;;  %v2537_v33 = vmul.f32 %v4021_v10, %v4897_v56  ;;  %v2733_v10 = vsub.s32 6, %v4268_v11 }
 0xe47   : > { %4026 = vrsqrt.f32 %v2530_v32 }
 0xe48   : > { %3171 = vmatmul.mubr.msk.f32.vlgmr.msra.gmra.mrb[72].mxu0 %vm555_vm2, %v5026_v23  ;;  %v2546_v26 = vmul.f32 %v2544_v55, %v2537_v33  ;;  %v2734_v33 = vrot.slane %v4875_v29, %v2733_v10 }
 0xe49   : > { %v4023_v16 = vpop.eup %4022  ;;  %2664 = vmatprep.mubr.f32.mxu0 %v4110_v4 }
 0xe4a   : > { %v5032_v7 = vadd.f32 %v2553_v35, %v2546_v26  ;;  %v2538_v31 = vmul.f32 %v4023_v16, %v4902_v36 }
 0xe4c   : > { %3172 = vmatmul.mubr.msk.f32.gmra.mrb[74].mxu0 %vm555_vm2, %v5032_v7  ;;  %v2547_v34 = vmul.f32 %v2544_v55, %v2538_v31 }
 0xe4d   : > { %v4025_v46 = vpop.eup %4024  ;;  %2670 = vmatprep.mubr.f32.mxu0 %v4110_v4 }
 0xe4e   : > { %v5038_v56 = vadd.f32 %v2553_v35, %v2547_v34  ;;  %v2539_v38 = vmul.f32 %v4025_v46, %v4907_v14  ;;  %v2711_v14 = vld [vmem:[%s5165_s8 + $0x60] sm:$0xff] }
 0xe50   : > { %3173 = vmatmul.mubr.msk.f32.gmra.mrb[76].mxu0 %vm555_vm2, %v5038_v56  ;;  %v2548_v28 = vmul.f32 %v2544_v55, %v2539_v38 }
 0xe51   : > { %v4027_v48 = vpop.eup %4026  ;;  %2676 = vmatprep.mubr.f32.mxu0 %v4110_v4 }
 0xe52   : > { %v5044_v49 = vadd.f32 %v2553_v35, %v2548_v28  ;;  %v2540_v36 = vmul.f32 %v4027_v48, %v4912_v3  ;;  %v2712_v3 = vld [vmem:[%s5165_s8 + $0x68] sm:$0xff] }
 0xe53   : > { %v3777_v51 = vpack.c.bf16 %v2712_v3, %v2711_v14 }
 0xe54   : > { %3174 = vmatmul.mubr.msk.f32.gmra.mrb[78].mxu0 %vm555_vm2, %v5044_v49  ;;  %v2549_v21 = vmul.f32 %v2544_v55, %v2540_v36 }
 0xe55   : > { %2682 = vmatprep.mubr.f32.mxu0 %v4110_v4  ;;  %3778 = vmatpush3.bf16.msra.mxu1 %v3777_v51 }
 0xe56   : > { %v5050_v44 = vadd.f32 %v2553_v35, %v2549_v21  ;;  %3780 = vmatprep.subr.bf16.mxu1 %v3779_v40 }
 0xe58   : > { %3175 = vmatmul.mubr.msk.f32.gmra.mrb[80].mxu0 %vm555_vm2, %v5050_v44 }
 0xe59   : > { %3675 = vmatprep.mubr.msk.f32.mxu0 %vm4109_vm0, %v4110_v4  ;;  %3782 = vmatpush3.bf16.msra.mxu1 %v3781_v63 }
 0xf1b   : > { %v2660_v6 = vpop.f32.mrb[72].mxu0 }
 0xf1c   : > { %v2661_v8 = vadd.f32 %v2660_v6, %v2572_v1  ;;  %v2662_v42 = vpop.f32.mrb[73].mxu0 }
 0xf1d   : > { %v2663_v19 = vadd.f32 %v2662_v42, %v2576_v37 }
 0xf1e   : > { %v2689_v22 = vmax.f32 %v2661_v8, 0.0 }
 0xf1f   : > { %v2690_v43 = vmax.f32 %v2663_v19, 0.0  ;;  %v2666_v62 = vpop.f32.mrb[74].mxu0 }
 0xf20   : > { %v2667_v25 = vadd.f32 %v2666_v62, %v2572_v1  ;;  %v2668_v45 = vpop.f32.mrb[75].mxu0 }
 0xf21   : > { %v2669_v27 = vadd.f32 %v2668_v45, %v2576_v37  ;;  %2799 = vmatprep.mubr.f32.mxu1 %v2690_v43 }
 0xf22   : > { %2800 = vmatmul.mubr.f32.vlgmr.msra.gmra.mrb[68].mxu1 %v2689_v22  ;;  %v2691_v59 = vmax.f32 %v2667_v25, 0.0 }
 0xf23   : > { %v2692_v52 = vmax.f32 %v2669_v27, 0.0  ;;  %v2672_v41 = vpop.f32.mrb[76].mxu0 }
 0xf24   : > { %v2673_v60 = vadd.f32 %v2672_v41, %v2572_v1  ;;  %v2674_v12 = vpop.f32.mrb[77].mxu0 }
 0xf25   : > { %v2675_v5 = vadd.f32 %v2674_v12, %v2576_v37  ;;  %2804 = vmatprep.mubr.f32.mxu1 %v2692_v52 }
 0xf26   : > { %2805 = vmatmul.mubr.f32.gmra.mrb[70].mxu1 %v2691_v59  ;;  %v2693_v17 = vmax.f32 %v2673_v60, 0.0 }
 0xf27   : > { %v2694_v15 = vmax.f32 %v2675_v5, 0.0  ;;  %v2678_v58 = vpop.f32.mrb[78].mxu0 }
 0xf28   : > { %v2679_v30 = vadd.f32 %v2678_v58, %v2572_v1  ;;  %v2680_v47 = vpop.f32.mrb[79].mxu0 }
 0xf29   : > { %v2681_v20 = vadd.f32 %v2680_v47, %v2576_v37  ;;  %2809 = vmatprep.mubr.f32.mxu1 %v2694_v15 }
 0xf2a   : > { %2810 = vmatmul.mubr.f32.gmra.mrb[72].mxu1 %v2693_v17  ;;  %v2695_v61 = vmax.f32 %v2679_v30, 0.0 }
 0xf2b   : > { %v2696_v55 = vmax.f32 %v2681_v20, 0.0  ;;  %v2684_v24 = vpop.f32.mrb[80].mxu0 }
 0xf2c   : > { %v2685_v35 = vadd.f32 %v2684_v24, %v2572_v1  ;;  %v2686_v13 = vpop.f32.mrb[81].mxu0 }
 0xf2d   : > { %v2687_v0 = vadd.f32 %v2686_v13, %v2576_v37  ;;  %2814 = vmatprep.mubr.f32.mxu1 %v2696_v55 }
 0xf2e   : > { %2815 = vmatmul.mubr.f32.gmra.mrb[74].mxu1 %v2695_v61  ;;  %v2697_v53 = vmax.f32 %v2685_v35, 0.0 }
 0xf2f   : > { %v2698_v39 = vmax.f32 %v2687_v0, 0.0 }
 0xf31   : > { %2819 = vmatprep.mubr.f32.mxu1 %v2698_v39 }
 0xf32   : > { %2820 = vmatmul.mubr.f32.gmra.mrb[76].mxu1 %v2697_v53 }
 0xff5   : > { %v3334_v32 = vpop.f32.mrb[68].mxu1 }
 0xff6   : > { %v3335_v26 = vpop.f32.mrb[69].mxu1 }
 0xff7   : > { %v3336_v16 = vadd.f32 %v3335_v26, %v3334_v32 }
 0xff9   : > { %v2802_v31 = vadd.f32 %v3336_v16, %v2734_v33  ;;  %v3337_v34 = vpop.f32.mrb[70].mxu1 }
 0xffa   : > { %v3338_v46 = vpop.f32.mrb[71].mxu1 }
 0xffb   : > { %v3339_v38 = vadd.f32 %v3338_v46, %v3337_v34  ;;  %v2825_v28 = vadd.f32 %v2802_v31, %v5026_v23  ;;  %v2897_v46 = vsub.s32 7, %v4268_v11 }
 0xffd   : > { %v2807_v48 = vadd.f32 %v3339_v38, %v2734_v33  ;;  %v3340_v36 = vpop.f32.mrb[72].mxu1  ;;  %v2830_v21 = vsel %vm555_vm2, %v2825_v28, 0.0 }
 0xffe   : > { %v3341_v14 = vpop.f32.mrb[73].mxu1  ;;  %2831 = vadd.xlane.f32.xlu0 %v2830_v21 }
 0xfff   : > { %v3342_v3 = vadd.f32 %v3341_v14, %v3340_v36  ;;  %v2826_v51 = vadd.f32 %v2807_v48, %v5032_v7  ;;  %v2898_v14 = vrot.slane %v4875_v29, %v2897_v46 }
0x1001   : > { %v2812_v18 = vadd.f32 %v3342_v3, %v2734_v33  ;;  %v3343_v9 = vpop.f32.mrb[74].mxu1  ;;  %v2833_v40 = vsel %vm555_vm2, %v2826_v51, 0.0 }
0x1002   : > { %v3344_v50 = vpop.f32.mrb[75].mxu1  ;;  %2834 = vadd.xlane.f32.xlu1 %v2833_v40 }
0x1003   : > { %v3345_v57 = vadd.f32 %v3344_v50, %v3343_v9  ;;  %v2827_v63 = vadd.f32 %v2812_v18, %v5038_v56  ;;  %v3176_v50 = vld [vmem:[%s5168_s11 + $0x8] ss:$0 sm:$0xff] }
0x1005   : > { %v2817_v54 = vadd.f32 %v3345_v57, %v2734_v33  ;;  %v3346_v23 = vpop.f32.mrb[76].mxu1  ;;  %v2836_v1 = vsel %vm555_vm2, %v2827_v63, 0.0 }
0x1006   : > { %v3347_v37 = vpop.f32.mrb[77].mxu1  ;;  %2837 = vadd.xlane.f32.xlu0 %v2836_v1 }
0x1007   : > { %v3348_v6 = vadd.f32 %v3347_v37, %v3346_v23  ;;  %v2828_v8 = vadd.f32 %v2817_v54, %v5044_v49 }
0x1009   : > { %v2822_v42 = vadd.f32 %v3348_v6, %v2734_v33  ;;  %v2839_v7 = vsel %vm555_vm2, %v2828_v8, 0.0 }
0x100a   : > { %2840 = vadd.xlane.f32.xlu1 %v2839_v7 }
0x100b   : > { %v2829_v19 = vadd.f32 %v2822_v42, %v5050_v44 }
0x100d   : > { %v2842_v43 = vsel %vm555_vm2, %v2829_v19, 0.0 }
0x100e   : > { %2843 = vadd.xlane.f32.xlu0 %v2842_v43 }
0x108b   : > { %v2832_v62 = vpop.xlane.xlu0 %2831 }
0x108c   : > { %v2845_v56 = vmul.f32 0.03125, %v2832_v62 }
0x108e   : > { %v2850_v22 = vsub.f32 %v2825_v28, %v2845_v56 }
0x108f   : > { %v2835_v25 = vpop.xlane.xlu1 %2834 }
0x1090   : > { %v2846_v45 = vmul.f32 0.03125, %v2835_v25  ;;  %v2855_v27 = vmul.f32 %v2850_v22, %v2850_v22  ;;  %v2913_v25 = vld [vmem:[%s5160_s3] sm:$0xff] }
0x1092   : > { %v2851_v52 = vsub.f32 %v2826_v51, %v2846_v45  ;;  %v2860_v41 = vsel %vm555_vm2, %v2855_v27, 0.0 }
0x1093   : > { %2861 = vadd.xlane.f32.xlu1 %v2860_v41  ;;  %v2838_v49 = vpop.xlane.xlu0 %2837 }
0x1094   : > { %v2847_v59 = vmul.f32 0.03125, %v2838_v49  ;;  %v2856_v60 = vmul.f32 %v2851_v52, %v2851_v52 }
0x1096   : > { %v2852_v12 = vsub.f32 %v2827_v63, %v2847_v59  ;;  %v2863_v5 = vsel %vm555_vm2, %v2856_v60, 0.0 }
0x1097   : > { %v2841_v44 = vpop.xlane.xlu1 %2840  ;;  %2864 = vadd.xlane.f32.xlu0 %v2863_v5 }
0x1098   : > { %v2848_v15 = vmul.f32 0.03125, %v2841_v44  ;;  %v2857_v58 = vmul.f32 %v2852_v12, %v2852_v12 }
0x109a   : > { %v2853_v17 = vsub.f32 %v2828_v8, %v2848_v15  ;;  %v2866_v30 = vsel %vm555_vm2, %v2857_v58, 0.0 }
0x109b   : > { %2867 = vadd.xlane.f32.xlu1 %v2866_v30  ;;  %v2844_v47 = vpop.xlane.xlu0 %2843 }
0x109c   : > { %v2849_v20 = vmul.f32 0.03125, %v2844_v47  ;;  %v2858_v55 = vmul.f32 %v2853_v17, %v2853_v17 }
0x109e   : > { %v2854_v24 = vsub.f32 %v2829_v19, %v2849_v20  ;;  %v2869_v61 = vsel %vm555_vm2, %v2858_v55, 0.0 }
0x109f   : > { %2870 = vadd.xlane.f32.xlu0 %v2869_v61 }
0x10a0   : > { %v2859_v35 = vmul.f32 %v2854_v24, %v2854_v24 }
0x10a2   : > { %v2872_v13 = vsel %vm555_vm2, %v2859_v35, 0.0 }
0x10a3   : > { %2873 = vadd.xlane.f32.xlu1 %v2872_v13 }
0x1120   : > { %v2862_v0 = vpop.xlane.xlu1 %2861 }
0x1121   : > { %v2875_v39 = vmul.f32 0.03125, %v2862_v0 }
0x1123   : > { %v2880_v53 = vadd.f32 1e-05, %v2875_v39 }
0x1124   : > { %v2865_v10 = vpop.xlane.xlu0 %2864 }
0x1125   : > { %4028 = vrsqrt.f32 %v2880_v53  ;;  %v2876_v32 = vmul.f32 0.03125, %v2865_v10 }
0x1127   : > { %v2881_v33 = vadd.f32 1e-05, %v2876_v32 }
0x1128   : > { %v2868_v26 = vpop.xlane.xlu1 %2867 }
0x1129   : > { %4030 = vrsqrt.f32 %v2881_v33  ;;  %v2877_v16 = vmul.f32 0.03125, %v2868_v26 }
0x112b   : > { %v2882_v31 = vadd.f32 1e-05, %v2877_v16 }
0x112c   : > { %v2871_v34 = vpop.xlane.xlu0 %2870 }
0x112d   : > { %4032 = vrsqrt.f32 %v2882_v31  ;;  %v2878_v38 = vmul.f32 0.03125, %v2871_v34 }
0x112f   : > { %v4029_v28 = vpop.eup %4028  ;;  %v2883_v48 = vadd.f32 1e-05, %v2878_v38 }
0x1130   : > { %v2890_v36 = vmul.f32 %v4029_v28, %v2850_v22  ;;  %v2874_v21 = vpop.xlane.xlu1 %2873 }
0x1131   : > { %4034 = vrsqrt.f32 %v2883_v48  ;;  %v2879_v3 = vmul.f32 0.03125, %v2874_v21 }
0x1132   : > { %v2899_v40 = vmul.f32 %v2898_v14, %v2890_v36 }
0x1133   : > { %v4031_v51 = vpop.eup %4030  ;;  %v2884_v18 = vadd.f32 1e-05, %v2879_v3 }
0x1134   : > { %v2891_v9 = vmul.f32 %v4031_v51, %v2851_v52  ;;  %v2908_v54 = vadd.f32 %v3176_v50, %v2899_v40 }
0x1135   : > { %4036 = vrsqrt.f32 %v2884_v18 }
0x1136   : > { %v2900_v11 = vmul.f32 %v2898_v14, %v2891_v9 }
0x1137   : > { %v4033_v57 = vpop.eup %4032 }
0x1138   : > { %v2892_v63 = vmul.f32 %v4033_v57, %v2852_v12  ;;  %v2909_v23 = vadd.f32 %v3176_v50, %v2900_v11 }
0x113a   : > { %v3784_v1 = vpack.c.bf16 %v2909_v23, %v2908_v54  ;;  %v2901_v29 = vmul.f32 %v2898_v14, %v2892_v63 }
0x113b   : > { %v4035_v37 = vpop.eup %4034 }
0x113c   : > { %v2893_v6 = vmul.f32 %v4035_v37, %v2853_v17  ;;  %3785 = vmatpush3.bf16.msra.mxu0 %v3784_v1  ;;  %v2910_v7 = vadd.f32 %v3176_v50, %v2901_v29 }
0x113d   : > { %3786 = vmatprep.subr.bf16.mxu0 %v4108_v2 }
0x113e   : > { %v2902_v8 = vmul.f32 %v2898_v14, %v2893_v6 }
0x113f   : > { %v4037_v42 = vpop.eup %4036 }
0x1140   : > { %v2911_v19 = vadd.f32 %v3176_v50, %v2902_v8  ;;  %v2894_v43 = vmul.f32 %v4037_v42, %v2854_v24 }
0x1142   : > { %v3787_v62 = vpack.c.bf16 %v2911_v19, %v2910_v7  ;;  %v2903_v56 = vmul.f32 %v2898_v14, %v2894_v43 }
0x1144   : > { %3788 = vmatpush3.bf16.msra.mxu0 %v3787_v62  ;;  %v2912_v22 = vadd.f32 %v3176_v50, %v2903_v56 }
0x1145   : > { %3673 = vmatprep.subr.mxu0 %v4110_v4 }
0x1148   : > { %3674 = vmatpush3.msra.mxu0 %v2912_v22 }
0x1149   : > { %3676 = vmatmul.mubr.msk.f32.vlgmr.msra.gmra.mrb[82].mxu0 %vm911_vm5, %v2913_v25 }
0x121c   : > { %v2983_v2 = vpop.f32.mrb[82].mxu0 }
0x121d   : > { %2987 = vst.msk [vmem:[%s423_s28] sm:$0xff] %vm555_vm2, %v2983_v2  ;;  %v3677_v4 = vpop.f32.mrb[83].mxu0 }
0x121e   : > { %4057 = shalt.err (!%p4054_p3)
}
0x121f   : > { %s4058_s18 = scalar_lea.hbm %s5114_s0, 128  ;;  %s4062_s1 = scalar_lea.hbm %s5169_s12, 256 }
0x1220   : > { %p4059_p4 = scmp.ne.s32.totalorder %s5114_s0, %s4058_s18  ;;  %p4063_p9 = scmp.lt.u32.totalorder %s5114_s0, %s5169_s12 }
0x1221   : > { %p4064_p10 = scmp.lt.u32.totalorder %s4062_s1, %s4058_s18  ;;  %p4066_p12 = scmp.lt.u32.totalorder %s4058_s18, %s5114_s0 }
0x1222   : > { %p4060_p7 = pnand %p4059_p4, %p4226_p5 }
0x1223   : > { %p4065_p11 = por %p4064_p10, %p4063_p9 }
0x1224   : > { %p4061_p8 = pneg %p4060_p7 }
0x1225   : > { %p4067_p13 = por %p4066_p12, %p4065_p11 }
0x1227   : > { %p4068_p0 = pnand %p4067_p13, %p4061_p8 }
0x1229   : > { %4071 = shalt.err (!%p4068_p0)
}
0x122a   : > { %3795 = dma.vmem_to_hbm [thread:$0]  (%p4226_p5), %s5116_s29, 128, %s5114_s0, %s2989_s16  }
0x122b PF: > { %p3801_p1 = scmp.ge.s32.totalorder %s4106_s24, 2  ;;  %s3014_s20 = sand.u32 1, %s4094_s21  }
0x122c   : > { %s3015_s17 = scalar_lea.sflag [#allocation3], %s3014_s20 }
0x122d   : > { %p3798_p2 = pnand %p3801_p1, %p4230_p6 }
0x122f   : > { %4089 = dma.done.wait (!%p3798_p2), %s3015_s17, 128  }
0x1230   : > { %4091 = vsyncadd (!%p3798_p2), %s3015_s17, 4294967168  ;;  %p22_p3 = scmp.ge.s32.totalorder %s4213_s27, 4   ;;  %s5180_s21 = smov %s4098_s22 }
0x1231   : > { %s5181_s22 = smov %s4102_s23  ;;  %s5182_s23 = smov %s4224_s30 }
0x1232   : > { %s5183_s24 = smov %s4213_s27  ;;  %24 = sbr.rel (!%p22_p3) target bundleno = 6 (0x6), region = 106 }
0x1239   :  { %3020 = vsyncpa [#allocation3], 1 }
0x123a   :  { %3022 = vsyncpa [#allocation3 + $0x1], 1 }

</bundles_post_ra>
